<compile_context>
chip_gen: v6e
topology: v6e:2x2x1
jax: 0.10.0
libtpu: 0.0.40
codegen_flags: <defaults>
</compile_context>

<pallas_src>
import functools
import math

import numpy as np
import jax
import jax.numpy as jnp
from jax.experimental import pallas as pl
from jax.experimental.pallas import tpu as pltpu


def _round_up(x, m):
    return ((x + m - 1) // m) * m


def _recip_nr(x):
    """EUP approx reciprocal refined with one Newton step (~f32 accuracy)."""
    r = pl.reciprocal(x, approx=True)
    return r * (2.0 - x * r)


def _poincare_linear_kernel(x_ref, z_ref, k_ref, sh_ref, o_ref, *, c, inv_rc):
    x = x_ref[...]                                  # (TM, INP) native dtype
    z = z_ref[...]                                  # (INP, OUTP) matmul dtype
    k2g = k_ref[...].astype(jnp.float32)            # (1, OUTP) = 2*||w||_col
    sinh_d = sh_ref[...].astype(jnp.float32)        # (1, OUTP) = sinh(2*sqrt(c)*r)

    # c*||x||^2 in f32 (boundary-sensitive); single XLU reduction per tile.
    x32 = x.astype(jnp.float32)
    cx2 = c * jnp.sum(x32 * x32, axis=-1, keepdims=True)            # (TM, 1)

    # MXU in the matmul dtype (bf16 by default), f32 accumulation.
    # term1 == 2*sqrt(c)*cosh(2*sqrt(c)*r) * (x @ z_unit)
    term1 = jnp.dot(x.astype(z.dtype), z, preferred_element_type=jnp.float32)

    # Exact divide: denominator can be ~1e-15 near the ball boundary.
    inv_den = 1.0 / jnp.maximum(1.0 - cx2, 1e-15)                    # (TM, 1)
    arg = (term1 - (1.0 + cx2) * sinh_d) * inv_den                   # (TM, OUTP)

    # Fused sinh(k*arsinh(arg)), k = 2*||w||_col = rc * (2*z_norm/rc):
    #   u = |arg| + sqrt(arg^2+1);  sinh(k*log u) = 0.5*(u^k - u^-k)
    # -> sqrt+log+exp+vrcp on the EUP instead of sqrt+log+2*exp.
    a = jnp.abs(arg)
    u = a + jnp.sqrt(a * a + 1.0)
    p = jnp.exp(k2g * jnp.log(u))
    sgn = jnp.where(arg < 0, -1.0, 1.0)
    yp = 0.5 * sgn * (p - _recip_nr(p))             # = sinh(rc*mlr) = rc * y

    # sum(yp^2) == c*||y||^2, so the 1/rc factor folds into the final per-row
    # scale (no extra (TM, OUT) multiplies).
    sq = jnp.sum(yp * yp, axis=-1, keepdims=True)                    # (TM, 1)
    s = _recip_nr(1.0 + jnp.sqrt(1.0 + sq))                          # (TM, 1)

    # projx fused analytically: rc*||y*s|| = sqrt(sq)*s.  (The 1e-30 floor only
    # guards the reciprocal for all-zero rows; the reference floors the
    # post-scale norm at 1e-15 -- both leave the clip branch inactive there.)
    nrm = jnp.sqrt(jnp.maximum(sq, 1e-30)) * s                       # (TM, 1)
    maxn = 1.0 - 4e-3                                                # = rc*maxnorm
    # approx reciprocal only matters when clipping actually engages (boundary).
    clip = jnp.where(nrm > maxn, maxn * pl.reciprocal(nrm, approx=True), 1.0)

    o_ref[...] = (yp * ((inv_rc * s) * clip)).astype(o_ref.dtype)


def _choose_tm(n):
    """Row tile: large for streaming (<=512), clamped (multiple of 32, sublane-
    safe for f32/bf16/int8) for small n, and split >=2 ways when possible so
    both v7x TensorCores get work."""
    tm = min(512, _round_up(max(n, 1), 32))
    if tm >= 64 and -(-n // tm) < 2:
        tm = max(32, _round_up(-(-n // 2), 32))
    return tm


def _vmem_bytes(tm, in_p, out_p, x_bytes, w_bytes, o_bytes, w_bufs):
    return (2 * tm * in_p * x_bytes              # double-buffered x stream
            + w_bufs * in_p * out_p * w_bytes    # resident weight
            + w_bufs * 2 * 8 * out_p * 4         # (1, OUTP) f32 vectors (8-sublane pad)
            + 2 * tm * out_p * o_bytes           # double-buffered output
            + 4 * tm * out_p * 4)                # f32 epilogue intermediates headroom


def poincare_linear_pallas(x, weight_g, weight_v, bias, c, *, tm=None,
                           matmul_dtype=jnp.bfloat16):
    """x: (..., in_features) -> (..., out_features).  out_split == 1 path."""
    in_dim, out_dim = weight_v.shape
    orig_shape = x.shape
    xf = x.reshape(-1, in_dim)            # native dtype; f32 cx2 computed in-kernel
    n = xf.shape[0]

    c_f = float(c)
    rc = math.sqrt(c_f)

    # ---- weight-only math, hoisted out of the hot path ----------------------
    wv = weight_v.astype(jnp.float32)
    col_norm = jnp.sqrt(jnp.sum(wv * wv, axis=0))
    z_unit = wv / jnp.maximum(col_norm, 1e-15)                       # (IN, OUT)
    drcr = (2.0 * rc) * bias.astype(jnp.float32)                     # (OUT,)
    sinh_d = jnp.sinh(drcr).reshape(1, out_dim)                      # (1, OUT)
    z_scaled = (z_unit * ((2.0 * rc) * jnp.cosh(drcr))).astype(matmul_dtype)
    k2g = (2.0 * weight_g.astype(jnp.float32)).reshape(1, out_dim)   # rc*(2*z_norm/rc)

    # ---- lane-dense padding: IN/OUT to multiples of 128 ----------------------
    in_p = _round_up(in_dim, 128)
    out_p = _round_up(out_dim, 128)
    if (in_p, out_p) != (in_dim, out_dim):
        # Padded cols give z=0, sinh_d=0, k=0 -> exact 0 outputs; padded x cols
        # are zero -> no effect on cx2 or the matmul.
        z_scaled = jnp.pad(z_scaled, ((0, in_p - in_dim), (0, out_p - out_dim)))
        sinh_d = jnp.pad(sinh_d, ((0, 0), (0, out_p - out_dim)))
        k2g = jnp.pad(k2g, ((0, 0), (0, out_p - out_dim)))

    # ---- row tile & generation-aware VMEM budget -----------------------------
    if tm is None:
        tm = _choose_tm(n)
    tm = max(32, _round_up(tm, 32))

    x_bytes = xf.dtype.itemsize
    w_bytes = np.dtype(matmul_dtype).itemsize
    try:
        vmem_cap = int(pltpu.get_tpu_info().vmem_capacity_bytes)
    except Exception:
        vmem_cap = 64 << 20                      # conservative: v7x per-core VMEM
    budget = (vmem_cap * 7) // 8                 # headroom below the physical cap
    while tm > 32 and _vmem_bytes(tm, in_p, out_p, x_bytes, w_bytes, x_bytes, 1) > budget:
        tm = max(32, _round_up(tm // 2, 32))
    # TODO(synk): add a K (in_dim) grid axis + accumulator/pl.when epilogue for
    # layers whose (in_p, out_p) weight no longer fits VMEM (v7x: 64 MiB).
    vmem_limit = int(min(budget, max(
        int(_vmem_bytes(tm, in_p, out_p, x_bytes, w_bytes, x_bytes, 2) * 1.25) + (8 << 20),
        16 << 20)))

    grid_m = -(-n // tm)
    n_pad = grid_m * tm
    if (n_pad, in_p) != (n, in_dim):
        # Zero rows/cols are safe: every row is processed independently.
        xf = jnp.pad(xf, ((0, n_pad - n), (0, in_p - in_dim)))

    kernel = functools.partial(_poincare_linear_kernel, c=c_f, inv_rc=1.0 / rc)

    def _call(single_buffer_consts):
        # Constant-index operands never change block index -> single-buffer them
        # (halves resident-weight VMEM; matters most under v7x's 64 MiB).
        ck = dict(pipeline_mode=pl.Buffered(1)) if single_buffer_consts else {}
        return pl.pallas_call(
            kernel,
            out_shape=jax.ShapeDtypeStruct((n_pad, out_p), xf.dtype),
            grid_spec=pltpu.PrefetchScalarGridSpec(
                num_scalar_prefetch=0,
                grid=(grid_m,),
                in_specs=[
                    pl.BlockSpec((tm, in_p), lambda i: (i, 0)),            # x stream
                    pl.BlockSpec((in_p, out_p), lambda i: (0, 0), **ck),   # z_scaled
                    pl.BlockSpec((1, out_p), lambda i: (0, 0), **ck),      # 2*||w||_col
                    pl.BlockSpec((1, out_p), lambda i: (0, 0), **ck),      # sinh(2*rc*r)
                ],
                out_specs=pl.BlockSpec((tm, out_p), lambda i: (i, 0)),
            ),
            compiler_params=pltpu.CompilerParams(
                dimension_semantics=("parallel",),
                vmem_limit_bytes=vmem_limit,
            ),
        )(xf, z_scaled, k2g, sinh_d)

    try:
        out = _call(True)
    except Exception:
        # pl.Buffered(1) unsupported on this jax version -> default double buffering.
        out = _call(False)

    out = out[:n, :out_dim]
    return out.reshape(*orig_shape[:-1], out_dim)


def poincare_linear_ref(x, weight_g, weight_v, bias, c):
    """Pure-JAX reference (mirrors the PyTorch code, out_split=1)."""
    rc = jnp.sqrt(c)
    col_norm = jnp.sqrt(jnp.sum(weight_v * weight_v, axis=0))
    z_unit = weight_v / jnp.maximum(col_norm, 1e-15)
    rcx = rc * x
    cx2 = jnp.sum(rcx ** 2, axis=-1, keepdims=True)
    drcr = 2.0 * rc * bias
    mlr = 2.0 * weight_g / rc * jnp.arcsinh(
        (2.0 * (rcx @ z_unit) * jnp.cosh(drcr) - (1.0 + cx2) * jnp.sinh(drcr))
        / jnp.maximum(1.0 - cx2, 1e-15))
    y = jnp.sinh(rc * mlr) / rc
    y = y / (1.0 + jnp.sqrt(1.0 + c * jnp.sum(y ** 2, axis=-1, keepdims=True)))
    norm = jnp.sqrt(jnp.maximum(jnp.sum(y ** 2, axis=-1, keepdims=True), 1e-15))
    maxnorm = (1.0 - 4e-3) / rc
    return jnp.where(norm > maxnorm, y / norm * maxnorm, y)


if __name__ == "__main__":
    # Module config (small, consistent with the layer): in=32, out=32, out_split=1
    batch, seq, in_dim, out_dim = 2, 8, 32, 32
    gain, out_split = 1.0, 1

    key = jax.random.PRNGKey(0)
    kx, kw, kb, kx2 = jax.random.split(key, 4)

    # deterministic parameter init, matching __init__:
    # weight ~ N(0, (2*in*out/out_split)^(-1/2) * gain); bias = 0
    std = (2 * in_dim * out_dim / out_split) ** (-0.5) * gain
    weight = jax.random.normal(kw, (in_dim, out_dim), dtype=jnp.float32) * std
    weight_g = jnp.sqrt(jnp.sum(weight * weight, axis=0))   # column norms, (out,)
    weight_v = weight
    bias_zero = jnp.zeros((out_dim,), dtype=jnp.float32)               # module init
    bias_rand = 0.02 * jax.random.normal(kb, (out_dim,), jnp.float32)  # exercise r-path

    # input points near the origin of the Poincare ball
    x = 0.05 * jax.random.normal(kx, (batch, seq, in_dim), dtype=jnp.float32)
    x_big = 0.05 * jax.random.normal(kx2, (2, 40, in_dim), dtype=jnp.float32)

    for c, bias in ((1.0, bias_zero), (0.7, bias_rand)):
        y_ref = poincare_linear_ref(x.reshape(-1, in_dim), weight_g, weight_v, bias, c)
        y_ref = y_ref.reshape(batch, seq, out_dim)

        # Default path: bf16-fed MXU (loose tolerance covers bf16 quantization).
        y_bf = jax.block_until_ready(
            poincare_linear_pallas(x, weight_g, weight_v, bias, c))
        assert y_bf.shape == (batch, seq, out_dim)
        assert bool(jnp.all(jnp.isfinite(y_bf)))
        assert bool(jnp.allclose(y_bf, y_ref, rtol=2e-2, atol=2e-3)), "bf16 path mismatch"

        # f32 matmul path: matches the reference tightly (semantics preserved).
        y_f32 = jax.block_until_ready(
            poincare_linear_pallas(x, weight_g, weight_v, bias, c,
                                   matmul_dtype=jnp.float32))
        assert bool(jnp.allclose(y_f32, y_ref, rtol=1e-4, atol=1e-5)), "f32 path mismatch"

    # Multi-tile row grid + row/column padding path (n=80 -> two row tiles).
    yb = jax.block_until_ready(
        poincare_linear_pallas(x_big, weight_g, weight_v, bias_zero, 1.0))
    yb_ref = poincare_linear_ref(x_big.reshape(-1, in_dim), weight_g, weight_v,
                                 bias_zero, 1.0).reshape(2, 40, out_dim)
    assert yb.shape == (2, 40, out_dim)
    assert bool(jnp.allclose(yb, yb_ref, rtol=2e-2, atol=2e-3)), "multi-tile mismatch"

    print("KERNEL_OK")
</pallas_src>

<mosaic_0001>
module attributes {stable_mosaic.version = 11 : i64} {
  func.func @_poincare_linear_kernel(%arg0: i32, %arg1: memref<32x128xf32, #tpu.memory_space<vmem>>, %arg2: memref<128x128xbf16, #tpu.memory_space<vmem>>, %arg3: memref<1x128xf32, #tpu.memory_space<vmem>>, %arg4: memref<1x128xf32, #tpu.memory_space<vmem>>, %arg5: memref<32x128xf32, #tpu.memory_space<vmem>>) attributes {dimension_semantics = [#tpu.dimension_semantics<parallel>], iteration_bounds = array<i64: 1>, scalar_prefetch = 0 : i64, scratch_operands = 0 : i64, tpu.core_type = #tpu.core_type<tc>, window_params = [{transform_indices = @transform_0, window_bounds = array<i64: 32, 128>}, {pipeline_mode = #tpu.pipeline_mode<synchronous>, transform_indices = @transform_1, window_bounds = array<i64: 128, 128>}, {pipeline_mode = #tpu.pipeline_mode<synchronous>, transform_indices = @transform_2, window_bounds = array<i64: 1, 128>}, {pipeline_mode = #tpu.pipeline_mode<synchronous>, transform_indices = @transform_3, window_bounds = array<i64: 1, 128>}, {transform_indices = @transform_4, window_bounds = array<i64: 32, 128>}]} {
    %c0 = arith.constant 0 : index
    %c0_0 = arith.constant 0 : index
    %0 = vector.load %arg1[%c0, %c0_0] : memref<32x128xf32, #tpu.memory_space<vmem>>, vector<32x128xf32>
    %c0_1 = arith.constant 0 : index
    %c0_2 = arith.constant 0 : index
    %1 = vector.load %arg2[%c0_1, %c0_2] : memref<128x128xbf16, #tpu.memory_space<vmem>>, vector<128x128xbf16>
    %c0_3 = arith.constant 0 : index
    %c0_4 = arith.constant 0 : index
    %2 = vector.load %arg3[%c0_3, %c0_4] : memref<1x128xf32, #tpu.memory_space<vmem>>, vector<1x128xf32>
    %c0_5 = arith.constant 0 : index
    %c0_6 = arith.constant 0 : index
    %3 = vector.load %arg4[%c0_5, %c0_6] : memref<1x128xf32, #tpu.memory_space<vmem>>, vector<1x128xf32>
    %4 = arith.mulf %0, %0 : vector<32x128xf32>
    %cst = arith.constant dense<0.000000e+00> : vector<32xf32>
    %5 = vector.multi_reduction <add>, %4, %cst [1] : vector<32x128xf32> to vector<32xf32>
    %6 = vector.shape_cast %5 : vector<32xf32> to vector<32x1xf32>
    %cst_7 = arith.constant 1.000000e+00 : f32
    %7 = vector.broadcast %cst_7 : f32 to vector<32x1xf32>
    %8 = arith.mulf %7, %6 : vector<32x1xf32>
    %9 = arith.truncf %0 : vector<32x128xf32> to vector<32x128xbf16>
    %cst_8 = arith.constant dense<0.000000e+00> : vector<32x128xf32>
    %10 = tpu.matmul %9, %1, %cst_8 {dimension_numbers = #tpu.dot_dimension_numbers<[1], [0], [0], [1], [0, 0, 1, 1], [], []>} : vector<32x128xbf16>, vector<128x128xbf16>, vector<32x128xf32> -> vector<32x128xf32>
    %cst_9 = arith.constant 1.000000e+00 : f32
    %11 = vector.broadcast %cst_9 : f32 to vector<32x1xf32>
    %12 = arith.subf %11, %8 : vector<32x1xf32>
    %cst_10 = arith.constant 1.000000e-15 : f32
    %13 = vector.broadcast %cst_10 : f32 to vector<32x1xf32>
    %14 = arith.maximumf %12, %13 : vector<32x1xf32>
    %cst_11 = arith.constant 1.000000e+00 : f32
    %15 = vector.broadcast %cst_11 : f32 to vector<32x1xf32>
    %16 = arith.divf %15, %14 : vector<32x1xf32>
    %cst_12 = arith.constant 1.000000e+00 : f32
    %17 = vector.broadcast %cst_12 : f32 to vector<32x1xf32>
    %18 = arith.addf %17, %8 : vector<32x1xf32>
    %19 = vector.broadcast %18 : vector<32x1xf32> to vector<32x128xf32>
    %20 = vector.broadcast %3 : vector<1x128xf32> to vector<32x128xf32>
    %21 = arith.mulf %19, %20 : vector<32x128xf32>
    %22 = arith.subf %10, %21 : vector<32x128xf32>
    %23 = vector.broadcast %16 : vector<32x1xf32> to vector<32x128xf32>
    %24 = arith.mulf %22, %23 : vector<32x128xf32>
    %25 = math.absf %24 : vector<32x128xf32>
    %26 = arith.mulf %25, %25 : vector<32x128xf32>
    %cst_13 = arith.constant 1.000000e+00 : f32
    %27 = vector.broadcast %cst_13 : f32 to vector<32x128xf32>
    %28 = arith.addf %26, %27 : vector<32x128xf32>
    %29 = math.sqrt %28 : vector<32x128xf32>
    %30 = arith.addf %25, %29 : vector<32x128xf32>
    %31 = math.log %30 : vector<32x128xf32>
    %32 = vector.broadcast %2 : vector<1x128xf32> to vector<32x128xf32>
    %33 = arith.mulf %32, %31 : vector<32x128xf32>
    %34 = math.exp %33 : vector<32x128xf32>
    %cst_14 = arith.constant 0.000000e+00 : f32
    %35 = vector.broadcast %cst_14 : f32 to vector<32x128xf32>
    %36 = arith.cmpf olt, %24, %35 : vector<32x128xf32>
    %cst_15 = arith.constant -1.000000e+00 : f32
    %cst_16 = arith.constant 1.000000e+00 : f32
    %37 = vector.broadcast %cst_15 : f32 to vector<32x128xf32>
    %38 = vector.broadcast %cst_16 : f32 to vector<32x128xf32>
    %39 = arith.select %36, %37, %38 : vector<32x128xi1>, vector<32x128xf32>
    %cst_17 = arith.constant 5.000000e-01 : f32
    %40 = vector.broadcast %cst_17 : f32 to vector<32x128xf32>
    %41 = arith.mulf %40, %39 : vector<32x128xf32>
    %42 = tpu.reciprocal %34 {approx = true} : vector<32x128xf32> -> vector<32x128xf32>
    %43 = arith.mulf %34, %42 : vector<32x128xf32>
    %cst_18 = arith.constant 2.000000e+00 : f32
    %44 = vector.broadcast %cst_18 : f32 to vector<32x128xf32>
    %45 = arith.subf %44, %43 : vector<32x128xf32>
    %46 = arith.mulf %42, %45 : vector<32x128xf32>
    %47 = arith.subf %34, %46 : vector<32x128xf32>
    %48 = arith.mulf %41, %47 : vector<32x128xf32>
    %49 = arith.mulf %48, %48 : vector<32x128xf32>
    %cst_19 = arith.constant dense<0.000000e+00> : vector<32xf32>
    %50 = vector.multi_reduction <add>, %49, %cst_19 [1] : vector<32x128xf32> to vector<32xf32>
    %51 = vector.shape_cast %50 : vector<32xf32> to vector<32x1xf32>
    %cst_20 = arith.constant 1.000000e+00 : f32
    %52 = vector.broadcast %cst_20 : f32 to vector<32x1xf32>
    %53 = arith.addf %52, %51 : vector<32x1xf32>
    %54 = math.sqrt %53 : vector<32x1xf32>
    %cst_21 = arith.constant 1.000000e+00 : f32
    %55 = vector.broadcast %cst_21 : f32 to vector<32x1xf32>
    %56 = arith.addf %55, %54 : vector<32x1xf32>
    %57 = tpu.reciprocal %56 {approx = true} : vector<32x1xf32> -> vector<32x1xf32>
    %58 = arith.mulf %56, %57 : vector<32x1xf32>
    %cst_22 = arith.constant 2.000000e+00 : f32
    %59 = vector.broadcast %cst_22 : f32 to vector<32x1xf32>
    %60 = arith.subf %59, %58 : vector<32x1xf32>
    %61 = arith.mulf %57, %60 : vector<32x1xf32>
    %cst_23 = arith.constant 1.000000e-30 : f32
    %62 = vector.broadcast %cst_23 : f32 to vector<32x1xf32>
    %63 = arith.maximumf %51, %62 : vector<32x1xf32>
    %64 = math.sqrt %63 : vector<32x1xf32>
    %65 = arith.mulf %64, %61 : vector<32x1xf32>
    %cst_24 = arith.constant 0.995999991 : f32
    %66 = vector.broadcast %cst_24 : f32 to vector<32x1xf32>
    %67 = arith.cmpf ogt, %65, %66 : vector<32x1xf32>
    %68 = tpu.reciprocal %65 {approx = true} : vector<32x1xf32> -> vector<32x1xf32>
    %cst_25 = arith.constant 0.995999991 : f32
    %69 = vector.broadcast %cst_25 : f32 to vector<32x1xf32>
    %70 = arith.mulf %69, %68 : vector<32x1xf32>
    %cst_26 = arith.constant 1.000000e+00 : f32
    %71 = vector.broadcast %cst_26 : f32 to vector<32x1xf32>
    %72 = arith.select %67, %70, %71 : vector<32x1xi1>, vector<32x1xf32>
    %cst_27 = arith.constant 1.000000e+00 : f32
    %73 = vector.broadcast %cst_27 : f32 to vector<32x1xf32>
    %74 = arith.mulf %73, %61 : vector<32x1xf32>
    %75 = arith.mulf %74, %72 : vector<32x1xf32>
    %76 = vector.broadcast %75 : vector<32x1xf32> to vector<32x128xf32>
    %77 = arith.mulf %48, %76 : vector<32x128xf32>
    %c0_28 = arith.constant 0 : index
    %c0_29 = arith.constant 0 : index
    %78 = vector.load %arg5[%c0_28, %c0_29] : memref<32x128xf32, #tpu.memory_space<vmem>>, vector<32x128xf32>
    tpu.vector_store %arg5[%c0_28, %c0_29], %77 {strides = array<i32>} : memref<32x128xf32, #tpu.memory_space<vmem>>, vector<32x128xf32>,
    return
  }
  func.func @transform_0(%arg0: i32) -> (i32, i32) {
    %c0_i32 = arith.constant 0 : i32
    %c0_i32_0 = arith.constant 0 : i32
    return %arg0, %c0_i32 : i32, i32
  }
  func.func @transform_1(%arg0: i32) -> (i32, i32) {
    %c0_i32 = arith.constant 0 : i32
    %c0_i32_0 = arith.constant 0 : i32
    %c0_i32_1 = arith.constant 0 : i32
    return %c0_i32, %c0_i32_0 : i32, i32
  }
  func.func @transform_2(%arg0: i32) -> (i32, i32) {
    %c0_i32 = arith.constant 0 : i32
    %c0_i32_0 = arith.constant 0 : i32
    %c0_i32_1 = arith.constant 0 : i32
    return %c0_i32, %c0_i32_0 : i32, i32
  }
  func.func @transform_3(%arg0: i32) -> (i32, i32) {
    %c0_i32 = arith.constant 0 : i32
    %c0_i32_0 = arith.constant 0 : i32
    %c0_i32_1 = arith.constant 0 : i32
    return %c0_i32, %c0_i32_0 : i32, i32
  }
  func.func @transform_4(%arg0: i32) -> (i32, i32) {
    %c0_i32 = arith.constant 0 : i32
    %c0_i32_0 = arith.constant 0 : i32
    return %arg0, %c0_i32 : i32, i32
  }
}

module attributes {stable_mosaic.version = 11 : i64} {
  func.func @_poincare_linear_kernel(%arg0: i32, %arg1: memref<32x128xf32, #tpu.memory_space<vmem>>, %arg2: memref<128x128xbf16, #tpu.memory_space<vmem>>, %arg3: memref<1x128xf32, #tpu.memory_space<vmem>>, %arg4: memref<1x128xf32, #tpu.memory_space<vmem>>, %arg5: memref<32x128xf32, #tpu.memory_space<vmem>>) attributes {dimension_semantics = [#tpu.dimension_semantics<parallel>], iteration_bounds = array<i64: 1>, scalar_prefetch = 0 : i64, scratch_operands = 0 : i64, tpu.core_type = #tpu.core_type<tc>, window_params = [{transform_indices = @transform_0, window_bounds = array<i64: 32, 128>}, {pipeline_mode = #tpu.pipeline_mode<synchronous>, transform_indices = @transform_1, window_bounds = array<i64: 128, 128>}, {pipeline_mode = #tpu.pipeline_mode<synchronous>, transform_indices = @transform_2, window_bounds = array<i64: 1, 128>}, {pipeline_mode = #tpu.pipeline_mode<synchronous>, transform_indices = @transform_3, window_bounds = array<i64: 1, 128>}, {transform_indices = @transform_4, window_bounds = array<i64: 32, 128>}]} {
    %c0 = arith.constant 0 : index
    %c0_0 = arith.constant 0 : index
    %0 = vector.load %arg1[%c0, %c0_0] : memref<32x128xf32, #tpu.memory_space<vmem>>, vector<32x128xf32>
    %c0_1 = arith.constant 0 : index
    %c0_2 = arith.constant 0 : index
    %1 = vector.load %arg2[%c0_1, %c0_2] : memref<128x128xbf16, #tpu.memory_space<vmem>>, vector<128x128xbf16>
    %c0_3 = arith.constant 0 : index
    %c0_4 = arith.constant 0 : index
    %2 = vector.load %arg3[%c0_3, %c0_4] : memref<1x128xf32, #tpu.memory_space<vmem>>, vector<1x128xf32>
    %c0_5 = arith.constant 0 : index
    %c0_6 = arith.constant 0 : index
    %3 = vector.load %arg4[%c0_5, %c0_6] : memref<1x128xf32, #tpu.memory_space<vmem>>, vector<1x128xf32>
    %4 = arith.mulf %0, %0 : vector<32x128xf32>
    %cst = arith.constant dense<0.000000e+00> : vector<32xf32>
    %5 = vector.multi_reduction <add>, %4, %cst [1] : vector<32x128xf32> to vector<32xf32>
    %6 = vector.shape_cast %5 : vector<32xf32> to vector<32x1xf32>
    %cst_7 = arith.constant 1.000000e+00 : f32
    %7 = vector.broadcast %cst_7 : f32 to vector<32x1xf32>
    %8 = arith.mulf %7, %6 : vector<32x1xf32>
    %9 = arith.truncf %0 : vector<32x128xf32> to vector<32x128xbf16>
    %cst_8 = arith.constant dense<0.000000e+00> : vector<32x128xf32>
    %10 = tpu.matmul %9, %1, %cst_8 {dimension_numbers = #tpu.dot_dimension_numbers<[1], [0], [0], [1], [0, 0, 1, 1], [], []>} : vector<32x128xbf16>, vector<128x128xbf16>, vector<32x128xf32> -> vector<32x128xf32>
    %cst_9 = arith.constant 1.000000e+00 : f32
    %11 = vector.broadcast %cst_9 : f32 to vector<32x1xf32>
    %12 = arith.subf %11, %8 : vector<32x1xf32>
    %cst_10 = arith.constant 1.000000e-15 : f32
    %13 = vector.broadcast %cst_10 : f32 to vector<32x1xf32>
    %14 = arith.maximumf %12, %13 : vector<32x1xf32>
    %cst_11 = arith.constant 1.000000e+00 : f32
    %15 = vector.broadcast %cst_11 : f32 to vector<32x1xf32>
    %16 = arith.divf %15, %14 : vector<32x1xf32>
    %cst_12 = arith.constant 1.000000e+00 : f32
    %17 = vector.broadcast %cst_12 : f32 to vector<32x1xf32>
    %18 = arith.addf %17, %8 : vector<32x1xf32>
    %19 = vector.broadcast %18 : vector<32x1xf32> to vector<32x128xf32>
    %20 = vector.broadcast %3 : vector<1x128xf32> to vector<32x128xf32>
    %21 = arith.mulf %19, %20 : vector<32x128xf32>
    %22 = arith.subf %10, %21 : vector<32x128xf32>
    %23 = vector.broadcast %16 : vector<32x1xf32> to vector<32x128xf32>
    %24 = arith.mulf %22, %23 : vector<32x128xf32>
    %25 = math.absf %24 : vector<32x128xf32>
    %26 = arith.mulf %25, %25 : vector<32x128xf32>
    %cst_13 = arith.constant 1.000000e+00 : f32
    %27 = vector.broadcast %cst_13 : f32 to vector<32x128xf32>
    %28 = arith.addf %26, %27 : vector<32x128xf32>
    %29 = math.sqrt %28 : vector<32x128xf32>
    %30 = arith.addf %25, %29 : vector<32x128xf32>
    %31 = math.log %30 : vector<32x128xf32>
    %32 = vector.broadcast %2 : vector<1x128xf32> to vector<32x128xf32>
    %33 = arith.mulf %32, %31 : vector<32x128xf32>
    %34 = math.exp %33 : vector<32x128xf32>
    %cst_14 = arith.constant 0.000000e+00 : f32
    %35 = vector.broadcast %cst_14 : f32 to vector<32x128xf32>
    %36 = arith.cmpf olt, %24, %35 : vector<32x128xf32>
    %cst_15 = arith.constant -1.000000e+00 : f32
    %cst_16 = arith.constant 1.000000e+00 : f32
    %37 = vector.broadcast %cst_15 : f32 to vector<32x128xf32>
    %38 = vector.broadcast %cst_16 : f32 to vector<32x128xf32>
    %39 = arith.select %36, %37, %38 : vector<32x128xi1>, vector<32x128xf32>
    %cst_17 = arith.constant 5.000000e-01 : f32
    %40 = vector.broadcast %cst_17 : f32 to vector<32x128xf32>
    %41 = arith.mulf %40, %39 : vector<32x128xf32>
    %42 = tpu.reciprocal %34 {approx = true} : vector<32x128xf32> -> vector<32x128xf32>
    %43 = arith.mulf %34, %42 : vector<32x128xf32>
    %cst_18 = arith.constant 2.000000e+00 : f32
    %44 = vector.broadcast %cst_18 : f32 to vector<32x128xf32>
    %45 = arith.subf %44, %43 : vector<32x128xf32>
    %46 = arith.mulf %42, %45 : vector<32x128xf32>
    %47 = arith.subf %34, %46 : vector<32x128xf32>
    %48 = arith.mulf %41, %47 : vector<32x128xf32>
    %49 = arith.mulf %48, %48 : vector<32x128xf32>
    %cst_19 = arith.constant dense<0.000000e+00> : vector<32xf32>
    %50 = vector.multi_reduction <add>, %49, %cst_19 [1] : vector<32x128xf32> to vector<32xf32>
    %51 = vector.shape_cast %50 : vector<32xf32> to vector<32x1xf32>
    %cst_20 = arith.constant 1.000000e+00 : f32
    %52 = vector.broadcast %cst_20 : f32 to vector<32x1xf32>
    %53 = arith.addf %52, %51 : vector<32x1xf32>
    %54 = math.sqrt %53 : vector<32x1xf32>
    %cst_21 = arith.constant 1.000000e+00 : f32
    %55 = vector.broadcast %cst_21 : f32 to vector<32x1xf32>
    %56 = arith.addf %55, %54 : vector<32x1xf32>
    %57 = tpu.reciprocal %56 {approx = true} : vector<32x1xf32> -> vector<32x1xf32>
    %58 = arith.mulf %56, %57 : vector<32x1xf32>
    %cst_22 = arith.constant 2.000000e+00 : f32
    %59 = vector.broadcast %cst_22 : f32 to vector<32x1xf32>
    %60 = arith.subf %59, %58 : vector<32x1xf32>
    %61 = arith.mulf %57, %60 : vector<32x1xf32>
    %cst_23 = arith.constant 1.000000e-30 : f32
    %62 = vector.broadcast %cst_23 : f32 to vector<32x1xf32>
    %63 = arith.maximumf %51, %62 : vector<32x1xf32>
    %64 = math.sqrt %63 : vector<32x1xf32>
    %65 = arith.mulf %64, %61 : vector<32x1xf32>
    %cst_24 = arith.constant 0.995999991 : f32
    %66 = vector.broadcast %cst_24 : f32 to vector<32x1xf32>
    %67 = arith.cmpf ogt, %65, %66 : vector<32x1xf32>
    %68 = tpu.reciprocal %65 {approx = true} : vector<32x1xf32> -> vector<32x1xf32>
    %cst_25 = arith.constant 0.995999991 : f32
    %69 = vector.broadcast %cst_25 : f32 to vector<32x1xf32>
    %70 = arith.mulf %69, %68 : vector<32x1xf32>
    %cst_26 = arith.constant 1.000000e+00 : f32
    %71 = vector.broadcast %cst_26 : f32 to vector<32x1xf32>
    %72 = arith.select %67, %70, %71 : vector<32x1xi1>, vector<32x1xf32>
    %cst_27 = arith.constant 1.000000e+00 : f32
    %73 = vector.broadcast %cst_27 : f32 to vector<32x1xf32>
    %74 = arith.mulf %73, %61 : vector<32x1xf32>
    %75 = arith.mulf %74, %72 : vector<32x1xf32>
    %76 = vector.broadcast %75 : vector<32x1xf32> to vector<32x128xf32>
    %77 = arith.mulf %48, %76 : vector<32x128xf32>
    %c0_28 = arith.constant 0 : index
    %c0_29 = arith.constant 0 : index
    %78 = vector.load %arg5[%c0_28, %c0_29] : memref<32x128xf32, #tpu.memory_space<vmem>>, vector<32x128xf32>
    tpu.vector_store %arg5[%c0_28, %c0_29], %77 {strides = array<i32>} : memref<32x128xf32, #tpu.memory_space<vmem>>, vector<32x128xf32>,
    return
  }
  func.func @transform_0(%arg0: i32) -> (i32, i32) {
    %c0_i32 = arith.constant 0 : i32
    %c0_i32_0 = arith.constant 0 : i32
    return %arg0, %c0_i32 : i32, i32
  }
  func.func @transform_1(%arg0: i32) -> (i32, i32) {
    %c0_i32 = arith.constant 0 : i32
    %c0_i32_0 = arith.constant 0 : i32
    %c0_i32_1 = arith.constant 0 : i32
    return %c0_i32, %c0_i32_0 : i32, i32
  }
  func.func @transform_2(%arg0: i32) -> (i32, i32) {
    %c0_i32 = arith.constant 0 : i32
    %c0_i32_0 = arith.constant 0 : i32
    %c0_i32_1 = arith.constant 0 : i32
    return %c0_i32, %c0_i32_0 : i32, i32
  }
  func.func @transform_3(%arg0: i32) -> (i32, i32) {
    %c0_i32 = arith.constant 0 : i32
    %c0_i32_0 = arith.constant 0 : i32
    %c0_i32_1 = arith.constant 0 : i32
    return %c0_i32, %c0_i32_0 : i32, i32
  }
  func.func @transform_4(%arg0: i32) -> (i32, i32) {
    %c0_i32 = arith.constant 0 : i32
    %c0_i32_0 = arith.constant 0 : i32
    return %arg0, %c0_i32 : i32, i32
  }
}

</mosaic_0001>

<bundles_post_ra>
// kernel: tpu_custom_call.1
= control target key start
LH: loop header
LB: loop body
LE: loop exit
PB: predicated region body
PF: predicated region fallthrough
CT: control target
= control target key end

     0   :  { %9 = vsyncpa [#allocation3], 0  ;;  %s786_s0 = inlined_call_operand.hbm [shape: f32[32,128], index: 0, kind: input, shape index: {}]   ;;  %s787_s1 = inlined_call_operand.hbm [shape: bf16[128,128], index: 1, kind: input, shape index: {}]   ;;  %s788_s2 = inlined_call_operand.vmem [shape: f32[1,128], index: 2, kind: input, shape index: {}]   ;;  %s789_s3 = inlined_call_operand.vmem [shape: f32[1,128], index: 3, kind: input, shape index: {}]   ;;  %s790_s4 = inlined_call_operand.hbm [shape: f32[32,128], index: 4, kind: output, shape index: {}]  }
   0x1   :  { %10 = vsyncpa [#allocation6], 0 }
   0x2   :  { %11 = vsyncpa [#allocation4], 0  ;;  %s664_s15 = smov [#allocation2]  }
   0x3   :  { %s17_s16 = sshll.u32 %s664_s15, 4  ;;  %s18_s16 = int_to_ptr.vmem [resolvable:$true] %s17_s16 }
   0x4   :  { %s606_s17 = scalar_lea.vmem %s18_s16, 512  ;;  %p611_p1 = scmp.lt.s32.totalorder %s18_s16, %s18_s16 }
   0x5   :  { %p607_p0 = scmp.ne.s32.totalorder %s18_s16, %s606_s17  ;;  %p612_p2 = scmp.lt.s32.totalorder %s606_s17, %s606_s17 }
   0x7   :  { %p613_p3 = por %p612_p2, %p611_p1 }
   0x9   :  { %p614_p4 = pnand %p613_p3, %p607_p0 }
   0xb   :  { %617 = shalt.err (!%p614_p4)
}
   0xc   :  { %s665_s18 = smov 128   ;;  %s666_s19 = smov 8  }
   0xd   :  { %23 = dma.hbm_to_vmem [thread:$0]  %s786_s0, 512, %s18_s16, [#allocation3], %s665_s18, %s665_s18, %s666_s19  }
   0xe   :  { %s667_s22 = smov [#allocation5]  }
   0xf   :  { %s29_s23 = sshll.u32 %s667_s22, 4  ;;  %s30_s23 = int_to_ptr.vmem [resolvable:$true] %s29_s23 }
  0x10   :  { %s626_s24 = scalar_lea.vmem %s30_s23, 1024  ;;  %p631_p6 = scmp.lt.s32.totalorder %s30_s23, %s30_s23 }
  0x11   :  { %p627_p5 = scmp.ne.s32.totalorder %s30_s23, %s626_s24  ;;  %p632_p7 = scmp.lt.s32.totalorder %s626_s24, %s626_s24 }
  0x13   :  { %p633_p8 = por %p632_p7, %p631_p6 }
  0x15   :  { %p634_p9 = pnand %p633_p8, %p627_p5 }
  0x17   :  { %637 = shalt.err (!%p634_p9)
}
  0x18   :  { %s668_s25 = smov 64   ;;  %s669_s26 = smov 4  }
  0x19   :  { %35 = dma.hbm_to_vmem [thread:$0]  %s787_s1, 1024, %s30_s23, [#allocation6], %s668_s25, %s668_s25, %s669_s26  }
  0x1a   :  { %658 = dma.done.wait [#allocation3], 512  }
  0x1b   :  { %659 = vsyncadd [#allocation3], 4294966784 }
  0x1c   :  { %660 = dma.done.wait [#allocation6], 1024  }
  0x1d   :  { %661 = vsyncadd [#allocation6], 4294966272  ;;  %v518_v0 = vld [vmem:[#allocation5 + $0x38] sm:$0xff]   ;;  %v519_v1 = vld [vmem:[#allocation5 + $0x30] sm:$0xff]  }
  0x1e   :  { %490 = vmatprep.subr.bf16.mxu0 %v518_v0  ;;  %v520_v2 = vld [vmem:[#allocation5 + $0x28] sm:$0xff]   ;;  %v521_v3 = vld [vmem:[#allocation5 + $0x20] sm:$0xff]   ;;  %v49_v6 = vld [vmem:[#allocation2 + $0x10] sm:$0xff] }
  0x1f   :  { %491 = vmatpush3.bf16.msra.mxu0 %v518_v0  ;;  %v47_v4 = vld [vmem:[#allocation2] sm:$0xff]  ;;  %v48_v5 = vld [vmem:[#allocation2 + $0x8] sm:$0xff]  ;;  %v71_v8 = vmul.f32 %v49_v6, %v49_v6  ;;  %v50_v10 = vld [vmem:[#allocation2 + $0x18] sm:$0xff] }
  0x20   :  { %492 = vmatprep.subr.bf16.mxu0 %v519_v1  ;;  %v81_v7 = vpack.c.bf16 %v48_v5, %v47_v4  ;;  %v69_v9 = vmul.f32 %v47_v4, %v47_v4  ;;  %v522_v11 = vld [vmem:[#allocation5 + $0x18] sm:$0xff]   ;;  %v72_v12 = vmul.f32 %v50_v10, %v50_v10  ;;  %v70_v13 = vmul.f32 %v48_v5, %v48_v5  ;;  %v523_v14 = vld [vmem:[#allocation5 + $0x10] sm:$0xff]   ;;  %v524_v15 = vld [vmem:[#allocation5 + $0x8] sm:$0xff]  }
  0x21   :  { %77 = vadd.xlane.f32.xlu1 %v71_v8  ;;  %v525_v16 = vld [vmem:[#allocation5] sm:$0xff]   ;;  %v82_v17 = vpack.c.bf16 %v50_v10, %v49_v6 }
  0x22   :  { %506 = vmatprep.mubr.bf16.mxu0 %v81_v7  ;;  %73 = vadd.xlane.f32.xlu0 %v69_v9  ;;  %v478_v32 = vld [vmem:[%s789_s3] ss:$0 sm:$0xff] }
  0x23   :  { %493 = vmatpush3.bf16.msra.mxu0 %v519_v1 }
  0x24   :  { %494 = vmatprep.subr.bf16.mxu0 %v520_v2 }
  0x25   :  { %79 = vadd.xlane.f32.xlu1 %v72_v12 }
  0x26   :  { %75 = vadd.xlane.f32.xlu0 %v70_v13 }
  0x27   :  { %495 = vmatpush3.bf16.msra.mxu0 %v520_v2 }
  0x28   :  { %496 = vmatprep.subr.bf16.mxu0 %v521_v3 }
  0x2b   :  { %497 = vmatpush3.bf16.msra.mxu0 %v521_v3 }
  0x2c   :  { %498 = vmatprep.subr.bf16.mxu0 %v522_v11 }
  0x2f   :  { %499 = vmatpush3.bf16.msra.mxu0 %v522_v11 }
  0x30   :  { %500 = vmatprep.subr.bf16.mxu0 %v523_v14 }
  0x33   :  { %501 = vmatpush3.bf16.msra.mxu0 %v523_v14 }
  0x34   :  { %502 = vmatprep.subr.bf16.mxu0 %v524_v15 }
  0x37   :  { %503 = vmatpush3.bf16.msra.mxu0 %v524_v15 }
  0x38   :  { %504 = vmatprep.subr.bf16.mxu0 %v525_v16 }
  0x3b   :  { %505 = vmatpush3.bf16.msra.mxu0 %v525_v16 }
  0x3e   :  { %507 = vmatmul.mubr.bf16.vlgmr.msra.gmra.mxu0 %v82_v17 }
  0xaa   :  { %v78_v18 = vpop.xlane.xlu1 %77 }
  0xab   :  { %v74_v19 = vpop.xlane.xlu0 %73  ;;  %v182_v20 = vsub.f32 1.0, %v78_v18  ;;  %v198_v30 = vadd.f32 1.0, %v78_v18 }
  0xac   :  { %v180_v22 = vsub.f32 1.0, %v74_v19  ;;  %v196_v31 = vadd.f32 1.0, %v74_v19 }
  0xad   :  { %v186_v23 = vmax.f32 %v182_v20, 1e-15  ;;  %v208_v34 = vmul.f32 %v478_v32, %v198_v30 }
  0xae   :  { %v80_v21 = vpop.xlane.xlu1 %79  ;;  %v184_v26 = vmax.f32 %v180_v22, 1e-15  ;;  %v206_v38 = vmul.f32 %v478_v32, %v196_v31 }
  0xaf   :  { %v183_v24 = vsub.f32 1.0, %v80_v21  ;;  %v76_v25 = vpop.xlane.xlu0 %75  ;;  %526 = vrcp.f32 %v186_v23  ;;  %v199_v33 = vadd.f32 1.0, %v80_v21 }
  0xb0   :  { %v181_v27 = vsub.f32 1.0, %v76_v25  ;;  %528 = vrcp.f32 %v184_v26  ;;  %v197_v40 = vadd.f32 1.0, %v76_v25 }
  0xb1   :  { %v187_v28 = vmax.f32 %v183_v24, 1e-15  ;;  %v209_v44 = vmul.f32 %v478_v32, %v199_v33 }
  0xb2   :  { %v185_v29 = vmax.f32 %v181_v27, 1e-15  ;;  %v207_v51 = vmul.f32 %v478_v32, %v197_v40 }
  0xb3   :  { %530 = vrcp.f32 %v187_v28  ;;  %v479_v28 = vld [vmem:[%s788_s2] ss:$0 sm:$0xff]  ;;  %s671_s2 = smov [#allocation7]  }
  0xb4   :  { %532 = vrcp.f32 %v185_v29  ;;  %s457_s30 = sshll.u32 %s671_s2, 4  ;;  %s458_s30 = int_to_ptr.vmem [resolvable:$true] %s457_s30 }
  0xb5   :  { %s638_s5 = scalar_lea.vmem %s458_s30, 512  ;;  %p643_p11 = scmp.lt.s32.totalorder %s458_s30, %s458_s30 }
  0xb6   :  { %p639_p10 = scmp.ne.s32.totalorder %s458_s30, %s638_s5  ;;  %p644_p12 = scmp.lt.s32.totalorder %s638_s5, %s638_s5 }
  0xb8   :  { %p645_p13 = por %p644_p12, %p643_p11 }
  0xba   :  { %p646_p0 = pnand %p645_p13, %p639_p10 }
  0xbc   :  { %v527_v35 = vpop.eup %526 }
  0xbd   :  { %v529_v39 = vpop.eup %528 }
  0xc0   :  { %v531_v45 = vpop.eup %530 }
  0xc1   :  { %v533_v52 = vpop.eup %532 }
  0xfe   :  { %v508_v36 = vpop.f32.mrf.mxu0 }
  0xff   :  { %v212_v37 = vsub.f32 %v508_v36, %v208_v34 }
 0x100   :  { %v165_v41 = vpop.f32.mrf.mxu0 }
 0x101   :  { %v709_v42 = vmul.f32 %v527_v35, %v212_v37  ;;  %v210_v43 = vsub.f32 %v165_v41, %v206_v38 }
 0x102   :  { %v509_v46 = vpop.f32.mrf.mxu0 }
 0x103   :  { %v220_v47 = vand.u32 2147483647, %v709_v42  ;;  %v712_v48 = vmul.f32 %v529_v39, %v210_v43  ;;  %v213_v49 = vsub.f32 %v509_v46, %v209_v44  ;;  %vm290_vm9 = vcmp.lt.f32.partialorder %v709_v42, 0.0 }
 0x104   :  { %v168_v50 = vpop.f32.mrf.mxu0 }
 0x105   :  { %v224_v53 = vmul.f32 %v220_v47, %v220_v47  ;;  %v218_v54 = vand.u32 2147483647, %v712_v48  ;;  %v715_v55 = vmul.f32 %v531_v45, %v213_v49  ;;  %v211_v56 = vsub.f32 %v168_v50, %v207_v51 }
 0x106   :  { %vm288_vm8 = vcmp.lt.f32.partialorder %v712_v48, 0.0 }
 0x107   :  { %v228_v57 = vadd.f32 1.0, %v224_v53  ;;  %v222_v58 = vmul.f32 %v218_v54, %v218_v54  ;;  %v221_v59 = vand.u32 2147483647, %v715_v55  ;;  %v718_v60 = vmul.f32 %v533_v52, %v211_v56 }
 0x108   :  { %vm291_vm11 = vcmp.lt.f32.partialorder %v715_v55, 0.0 }
 0x109   :  { %534 = vrsqrt.f32 %v228_v57  ;;  %v226_v61 = vadd.f32 1.0, %v222_v58  ;;  %v225_v62 = vmul.f32 %v221_v59, %v221_v59  ;;  %v219_v63 = vand.u32 2147483647, %v718_v60 }
 0x10a   :  { %vm246_vm0 = vcmp.eq.f32.partialorder %v228_v57, inf  ;;  %v249_v5 = vand.u32 2147483648, %v228_v57  ;;  %vm248_vm1 = vcmp.eq.f32.partialorder %v228_v57, 0.0  ;;  %vm289_vm10 = vcmp.lt.f32.partialorder %v718_v60, 0.0 }
 0x10b   :  { %536 = vrsqrt.f32 %v226_v61  ;;  %v229_v0 = vadd.f32 1.0, %v225_v62  ;;  %v223_v1 = vmul.f32 %v219_v63, %v219_v63  ;;  %vm232_vm2 = vcmp.eq.f32.partialorder %v226_v61, inf }
 0x10c   :  { %v235_v11 = vand.u32 2147483648, %v226_v61  ;;  %vm234_vm3 = vcmp.eq.f32.partialorder %v226_v61, 0.0 }
 0x10d   :  { %538 = vrsqrt.f32 %v229_v0  ;;  %v227_v2 = vadd.f32 1.0, %v223_v1  ;;  %vm253_vm4 = vcmp.eq.f32.partialorder %v229_v0, inf  ;;  %v256_v17 = vand.u32 2147483648, %v229_v0 }
 0x10e   :  { %vm255_vm5 = vcmp.eq.f32.partialorder %v229_v0, 0.0 }
 0x10f   :  { %540 = vrsqrt.f32 %v227_v2  ;;  %vm239_vm6 = vcmp.eq.f32.partialorder %v227_v2, inf  ;;  %v242_v23 = vand.u32 2147483648, %v227_v2  ;;  %vm241_vm7 = vcmp.eq.f32.partialorder %v227_v2, 0.0 }
 0x116   :  { %v535_v3 = vpop.eup %534 }
 0x117   :  { %v245_v4 = vmul.f32 %v535_v3, %v228_v57 }
 0x118   :  { %v537_v6 = vpop.eup %536 }
 0x119   :  { %v247_v7 = vsel %vm246_vm0, %v228_v57, %v245_v4  ;;  %v231_v9 = vmul.f32 %v537_v6, %v226_v61  ;;  %v670_v57 = vmov 1.0  }
 0x11a   :  { %v250_v8 = vsel %vm248_vm1, %v249_v5, %v247_v7  ;;  %v539_v12 = vpop.eup %538  ;;  %v292_v58 = vsel %vm288_vm8, -1.0, %v670_v57 }
 0x11b   :  { %v260_v10 = vadd.f32 %v250_v8, %v220_v47  ;;  %v233_v13 = vsel %vm232_vm2, %v226_v61, %v231_v9  ;;  %v252_v15 = vmul.f32 %v539_v12, %v229_v0  ;;  %v293_v9 = vsel %vm289_vm10, -1.0, %v670_v57 }
 0x11c   :  { %v236_v14 = vsel %vm234_vm3, %v235_v11, %v233_v13  ;;  %v541_v18 = vpop.eup %540  ;;  %v295_v13 = vsel %vm291_vm11, -1.0, %v670_v57  ;;  %v297_v60 = vmul.f32 0.5, %v293_v9 }
 0x11d   :  { %542 = vlog2.f32 %v260_v10  ;;  %v258_v16 = vadd.f32 %v236_v14, %v218_v54  ;;  %v254_v19 = vsel %vm253_vm4, %v229_v0, %v252_v15  ;;  %v238_v21 = vmul.f32 %v541_v18, %v227_v2 }
 0x11e   :  { %v257_v20 = vsel %vm255_vm5, %v256_v17, %v254_v19  ;;  %v299_v17 = vmul.f32 0.5, %v295_v13 }
 0x11f   :  { %544 = vlog2.f32 %v258_v16  ;;  %v261_v22 = vadd.f32 %v257_v20, %v221_v59  ;;  %v240_v24 = vsel %vm239_vm6, %v227_v2, %v238_v21  ;;  %v296_v2 = vmul.f32 0.5, %v292_v58 }
 0x120   :  { %v243_v25 = vsel %vm241_vm7, %v242_v23, %v240_v24 }
 0x121   :  { %546 = vlog2.f32 %v261_v22  ;;  %v259_v26 = vadd.f32 %v243_v25, %v219_v63  ;;  %v294_v63 = vsel %vm290_vm9, -1.0, %v670_v57 }
 0x122   :  { %v298_v6 = vmul.f32 0.5, %v294_v63 }
 0x123   :  { %548 = vlog2.f32 %v259_v26 }
 0x12a   :  { %v543_v27 = vpop.eup %542 }
 0x12b   :  { %v267_v29 = vmul.f32 0.6931472, %v543_v27 }
 0x12c   :  { %v545_v30 = vpop.eup %544 }
 0x12d   :  { %v278_v31 = vmul.f32 %v479_v28, %v267_v29  ;;  %v263_v32 = vmul.f32 0.6931472, %v545_v30 }
 0x12e   :  { %v547_v34 = vpop.eup %546 }
 0x12f   :  { %v284_v33 = vmul.f32 1.442695, %v278_v31  ;;  %v276_v35 = vmul.f32 %v479_v28, %v263_v32  ;;  %v269_v36 = vmul.f32 0.6931472, %v547_v34 }
 0x130   :  { %v549_v38 = vpop.eup %548 }
 0x131   :  { %550 = vpow2.f32 %v284_v33  ;;  %v280_v37 = vmul.f32 1.442695, %v276_v35  ;;  %v279_v39 = vmul.f32 %v479_v28, %v269_v36  ;;  %v265_v40 = vmul.f32 0.6931472, %v549_v38 }
 0x133   :  { %552 = vpow2.f32 %v280_v37  ;;  %v286_v41 = vmul.f32 1.442695, %v279_v39  ;;  %v277_v43 = vmul.f32 %v479_v28, %v265_v40 }
 0x135   :  { %554 = vpow2.f32 %v286_v41  ;;  %v282_v44 = vmul.f32 1.442695, %v277_v43 }
 0x137   :  { %556 = vpow2.f32 %v282_v44 }
 0x13e   :  { %v551_v45 = vpop.eup %550 }
 0x13f   :  { %558 = vrcp.f32 %v551_v45 }
 0x140   :  { %v553_v46 = vpop.eup %552 }
 0x141   :  { %560 = vrcp.f32 %v553_v46 }
 0x142   :  { %v555_v47 = vpop.eup %554 }
 0x143   :  { %562 = vrcp.f32 %v555_v47 }
 0x144   :  { %v557_v49 = vpop.eup %556 }
 0x145   :  { %564 = vrcp.f32 %v557_v49 }
 0x14c   :  { %v559_v50 = vpop.eup %558 }
 0x14d   :  { %v306_v51 = vmul.f32 %v559_v50, %v551_v45 }
 0x14e   :  { %v561_v52 = vpop.eup %560 }
 0x14f   :  { %v310_v53 = vsub.f32 2.0, %v306_v51  ;;  %v304_v54 = vmul.f32 %v561_v52, %v553_v46 }
 0x150   :  { %v563_v56 = vpop.eup %562 }
 0x151   :  { %v308_v59 = vsub.f32 2.0, %v304_v54  ;;  %v314_v61 = vmul.f32 %v559_v50, %v310_v53  ;;  %v307_v62 = vmul.f32 %v563_v56, %v555_v47 }
 0x152   :  { %v565_v1 = vpop.eup %564 }
 0x153   :  { %v312_v0 = vmul.f32 %v561_v52, %v308_v59  ;;  %v311_v3 = vsub.f32 2.0, %v307_v62  ;;  %v318_v5 = vsub.f32 %v551_v45, %v314_v61  ;;  %v305_v48 = vmul.f32 %v565_v1, %v557_v49 }
 0x155   :  { %v316_v4 = vsub.f32 %v553_v46, %v312_v0  ;;  %v309_v7 = vsub.f32 2.0, %v305_v48  ;;  %v315_v8 = vmul.f32 %v563_v56, %v311_v3  ;;  %v732_v11 = vmul.f32 %v318_v5, %v298_v6 }
 0x157   :  { %v728_v42 = vmul.f32 %v316_v4, %v296_v2  ;;  %v313_v12 = vmul.f32 %v565_v1, %v309_v7  ;;  %v319_v15 = vsub.f32 %v555_v47, %v315_v8  ;;  %v326_v16 = vmul.f32 %v732_v11, %v732_v11 }
 0x159   :  { %v324_v10 = vmul.f32 %v728_v42, %v728_v42  ;;  %v317_v14 = vsub.f32 %v557_v49, %v313_v12  ;;  %v740_v19 = vmul.f32 %v319_v15, %v299_v17 }
 0x15b   :  { %328 = vadd.xlane.f32.xlu0 %v324_v10  ;;  %v736_v55 = vmul.f32 %v317_v14, %v297_v60  ;;  %v327_v20 = vmul.f32 %v740_v19, %v740_v19 }
 0x15d   :  { %v325_v18 = vmul.f32 %v736_v55, %v736_v55 }
 0x15f   :  { %332 = vadd.xlane.f32.xlu0 %v326_v16  ;;  %330 = vadd.xlane.f32.xlu1 %v325_v18 }
 0x163   :  { %334 = vadd.xlane.f32.xlu1 %v327_v20 }
 0x1e4   :  { %v329_v21 = vpop.xlane.xlu0 %328 }
 0x1e5   :  { %v336_v22 = vadd.f32 1.0, %v329_v21  ;;  %v744_v29 = vmax.f32 %v329_v21, 1e-30 }
 0x1e7   :  { %566 = vrsqrt.f32 %v336_v22  ;;  %vm342_vm12 = vcmp.eq.f32.partialorder %v336_v22, inf  ;;  %v345_v32 = vand.u32 2147483648, %v336_v22  ;;  %vm344_vm13 = vcmp.eq.f32.partialorder %v336_v22, 0.0 }
 0x1e8   :  { %v333_v23 = vpop.xlane.xlu0 %332  ;;  %v331_v25 = vpop.xlane.xlu1 %330  ;;  %vm394_vm4 = vcmp.eq.f32.partialorder %v744_v29, inf  ;;  %v397_v6 = vand.u32 2147483648, %v744_v29  ;;  %vm396_vm5 = vcmp.eq.f32.partialorder %v744_v29, 0.0 }
 0x1e9   :  { %v338_v24 = vadd.f32 1.0, %v333_v23  ;;  %v337_v26 = vadd.f32 1.0, %v331_v25  ;;  %v746_v33 = vmax.f32 %v333_v23, 1e-30  ;;  %v749_v36 = vmax.f32 %v331_v25, 1e-30 }
 0x1eb   :  { %568 = vrsqrt.f32 %v338_v24  ;;  %vm356_vm14 = vcmp.eq.f32.partialorder %v338_v24, inf  ;;  %vm358_vm15 = vcmp.eq.f32.partialorder %v338_v24, 0.0  ;;  %v359_v41 = vand.u32 2147483648, %v338_v24 }
 0x1ec   :  { %570 = vrsqrt.f32 %v337_v26  ;;  %v335_v27 = vpop.xlane.xlu1 %334  ;;  %vm349_vm0 = vcmp.eq.f32.partialorder %v337_v26, inf  ;;  %v352_v45 = vand.u32 2147483648, %v337_v26  ;;  %vm351_vm1 = vcmp.eq.f32.partialorder %v337_v26, 0.0 }
 0x1ed   :  { %v339_v28 = vadd.f32 1.0, %v335_v27  ;;  %v753_v46 = vmax.f32 %v335_v27, 1e-30  ;;  %vm401_vm6 = vcmp.eq.f32.partialorder %v749_v36, inf  ;;  %vm408_vm7 = vcmp.eq.f32.partialorder %v746_v33, inf }
 0x1ee   :  { %vm410_vm8 = vcmp.eq.f32.partialorder %v746_v33, 0.0  ;;  %v411_v17 = vand.u32 2147483648, %v746_v33  ;;  %vm403_vm9 = vcmp.eq.f32.partialorder %v749_v36, 0.0 }
 0x1ef   :  { %572 = vrsqrt.f32 %v339_v28  ;;  %vm363_vm2 = vcmp.eq.f32.partialorder %v339_v28, inf  ;;  %v366_v56 = vand.u32 2147483648, %v339_v28  ;;  %vm365_vm3 = vcmp.eq.f32.partialorder %v339_v28, 0.0 }
 0x1f0   :  { %574 = vrsqrt.f32 %v744_v29  ;;  %vm415_vm10 = vcmp.eq.f32.partialorder %v753_v46, inf  ;;  %vm417_vm11 = vcmp.eq.f32.partialorder %v753_v46, 0.0 }
 0x1f1   :  { %576 = vrsqrt.f32 %v746_v33 }
 0x1f4   :  { %v567_v30 = vpop.eup %566 }
 0x1f5   :  { %v341_v31 = vmul.f32 %v567_v30, %v336_v22 }
 0x1f7   :  { %v343_v34 = vsel %vm342_vm12, %v336_v22, %v341_v31 }
 0x1f8   :  { %v569_v35 = vpop.eup %568  ;;  %v346_v37 = vsel %vm344_vm13, %v345_v32, %v343_v34 }
 0x1f9   :  { %v355_v38 = vmul.f32 %v569_v35, %v338_v24  ;;  %v368_v39 = vadd.f32 1.0, %v346_v37  ;;  %v571_v40 = vpop.eup %570 }
 0x1fa   :  { %v348_v43 = vmul.f32 %v571_v40, %v337_v26 }
 0x1fb   :  { %v357_v44 = vsel %vm356_vm14, %v338_v24, %v355_v38  ;;  %578 = vrcp.f32 %v368_v39  ;;  %v404_v24 = vand.u32 2147483648, %v749_v36 }
 0x1fc   :  { %580 = vrsqrt.f32 %v749_v36  ;;  %v360_v47 = vsel %vm358_vm15, %v359_v41, %v357_v44  ;;  %v350_v49 = vsel %vm349_vm0, %v337_v26, %v348_v43  ;;  %v573_v51 = vpop.eup %572 }
 0x1fd   :  { %v370_v50 = vadd.f32 1.0, %v360_v47  ;;  %v353_v52 = vsel %vm351_vm1, %v352_v45, %v350_v49  ;;  %v362_v53 = vmul.f32 %v573_v51, %v339_v28  ;;  %v575_v61 = vpop.eup %574 }
 0x1fe   :  { %v369_v54 = vadd.f32 1.0, %v353_v52  ;;  %v577_v62 = vpop.eup %576  ;;  %v393_v63 = vmul.f32 %v575_v61, %v744_v29 }
 0x1ff   :  { %582 = vrcp.f32 %v370_v50  ;;  %v364_v57 = vsel %vm363_vm2, %v339_v28, %v362_v53  ;;  %v407_v3 = vmul.f32 %v577_v62, %v746_v33 }
 0x200   :  { %584 = vrsqrt.f32 %v753_v46  ;;  %v367_v58 = vsel %vm365_vm3, %v366_v56, %v364_v57  ;;  %v395_v5 = vsel %vm394_vm4, %v744_v29, %v393_v63 }
 0x201   :  { %586 = vrcp.f32 %v369_v54  ;;  %v371_v59 = vadd.f32 1.0, %v367_v58  ;;  %v398_v13 = vsel %vm396_vm5, %v397_v6, %v395_v5  ;;  %v409_v60 = vsel %vm408_vm7, %v746_v33, %v407_v3 }
 0x202   :  { %v412_v25 = vsel %vm410_vm8, %v411_v17, %v409_v60  ;;  %v418_v33 = vand.u32 2147483648, %v753_v46 }
 0x203   :  { %588 = vrcp.f32 %v371_v59 }
 0x208   :  { %v579_v0 = vpop.eup %578 }
 0x209   :  { %v581_v1 = vpop.eup %580  ;;  %v376_v2 = vmul.f32 %v579_v0, %v368_v39 }
 0x20a   :  { %v400_v7 = vmul.f32 %v581_v1, %v749_v36 }
 0x20b   :  { %v380_v4 = vsub.f32 2.0, %v376_v2 }
 0x20c   :  { %v583_v48 = vpop.eup %582  ;;  %v402_v18 = vsel %vm401_vm6, %v749_v36, %v400_v7 }
 0x20d   :  { %v585_v8 = vpop.eup %584  ;;  %v378_v9 = vmul.f32 %v583_v48, %v370_v50  ;;  %v384_v10 = vmul.f32 %v579_v0, %v380_v4  ;;  %v405_v29 = vsel %vm403_vm9, %v404_v24, %v402_v18 }
 0x20e   :  { %v587_v12 = vpop.eup %586  ;;  %v414_v20 = vmul.f32 %v585_v8, %v753_v46 }
 0x20f   :  { %v377_v14 = vmul.f32 %v587_v12, %v369_v54  ;;  %v382_v15 = vsub.f32 2.0, %v378_v9  ;;  %v420_v16 = vmul.f32 %v398_v13, %v384_v10 }
 0x210   :  { %v589_v23 = vpop.eup %588  ;;  %v416_v30 = vsel %vm415_vm10, %v753_v46, %v414_v20 }
 0x211   :  { %v381_v21 = vsub.f32 2.0, %v377_v14  ;;  %v386_v22 = vmul.f32 %v583_v48, %v382_v15  ;;  %590 = vrcp.f32 %v420_v16  ;;  %v379_v26 = vmul.f32 %v589_v23, %v371_v59 }
 0x212   :  { %v419_v35 = vsel %vm417_vm11, %v418_v33, %v416_v30  ;;  %vm424_vm12 = vcmp.gt.f32.partialorder %v420_v16, 0.996 }
 0x213   :  { %v385_v27 = vmul.f32 %v587_v12, %v381_v21  ;;  %v422_v28 = vmul.f32 %v412_v25, %v386_v22  ;;  %v383_v31 = vsub.f32 2.0, %v379_v26 }
 0x215   :  { %v421_v32 = vmul.f32 %v405_v29, %v385_v27  ;;  %592 = vrcp.f32 %v422_v28  ;;  %v387_v34 = vmul.f32 %v589_v23, %v383_v31  ;;  %vm426_vm13 = vcmp.gt.f32.partialorder %v422_v28, 0.996 }
 0x217   :  { %594 = vrcp.f32 %v421_v32  ;;  %v423_v37 = vmul.f32 %v419_v35, %v387_v34  ;;  %vm425_vm14 = vcmp.gt.f32.partialorder %v421_v32, 0.996 }
 0x219   :  { %596 = vrcp.f32 %v423_v37  ;;  %vm427_vm15 = vcmp.gt.f32.partialorder %v423_v37, 0.996 }
 0x21e   :  { %v591_v38 = vpop.eup %590 }
 0x21f   :  { %v432_v36 = vmul.f32 0.996, %v591_v38 }
 0x221   :  { %v436_v39 = vsel %vm424_vm12, %v432_v36, 1.0 }
 0x222   :  { %v593_v40 = vpop.eup %592  ;;  %v440_v41 = vmul.f32 %v436_v39, %v384_v10 }
 0x223   :  { %v434_v43 = vmul.f32 0.996, %v593_v40 }
 0x224   :  { %v595_v44 = vpop.eup %594  ;;  %v444_v45 = vmul.f32 %v440_v41, %v728_v42 }
 0x225   :  { %v433_v47 = vmul.f32 0.996, %v595_v44  ;;  %v438_v49 = vsel %vm426_vm13, %v434_v43, 1.0 }
 0x226   :  { %v442_v46 = vmul.f32 %v438_v49, %v386_v22  ;;  %448 = vst [vmem:[#allocation7] sm:$0xff] %v444_v45  ;;  %v597_v51 = vpop.eup %596 }
 0x227   :  { %v437_v50 = vsel %vm425_vm14, %v433_v47, 1.0  ;;  %v435_v54 = vmul.f32 0.996, %v597_v51 }
 0x228   :  { %v441_v52 = vmul.f32 %v437_v50, %v385_v27  ;;  %v446_v53 = vmul.f32 %v442_v46, %v732_v11 }
 0x229   :  { %v439_v57 = vsel %vm427_vm15, %v435_v54, 1.0 }
 0x22a   :  { %v445_v56 = vmul.f32 %v441_v52, %v736_v55  ;;  %450 = vst [vmem:[#allocation7 + $0x10] sm:$0xff] %v446_v53  ;;  %v443_v58 = vmul.f32 %v439_v57, %v387_v34 }
 0x22c   :  { %449 = vst [vmem:[#allocation7 + $0x8] sm:$0xff] %v445_v56  ;;  %v447_v42 = vmul.f32 %v443_v58, %v740_v19 }
 0x22e   :  { %451 = vst [vmem:[#allocation7 + $0x18] sm:$0xff] %v447_v42 }
 0x22f   :  { %649 = shalt.err (!%p646_p0)
}
 0x230   :  { %463 = dma.vmem_to_hbm [thread:$0]  %s458_s30, 512, %s790_s4, [#allocation4], %s665_s18, %s665_s18, %s666_s19  }
 0x231   :  { %662 = dma.done.wait [#allocation4], 512  }
 0x232   :  { %663 = vsyncadd [#allocation4], 4294966784 }
 0x233   :  { %467 = vsyncpa [#allocation3], 1 }
 0x234   :  { %468 = vsyncpa [#allocation6], 1 }
 0x235   :  { %469 = vsyncpa [#allocation4], 1 }

// kernel: tpu_custom_call.1
= control target key start
LH: loop header
LB: loop body
LE: loop exit
PB: predicated region body
PF: predicated region fallthrough
CT: control target
= control target key end

     0   :  { %9 = vsyncpa [#allocation3], 0  ;;  %s786_s0 = inlined_call_operand.hbm [shape: f32[32,128], index: 0, kind: input, shape index: {}]   ;;  %s787_s1 = inlined_call_operand.hbm [shape: bf16[128,128], index: 1, kind: input, shape index: {}]   ;;  %s788_s2 = inlined_call_operand.vmem [shape: f32[1,128], index: 2, kind: input, shape index: {}]   ;;  %s789_s3 = inlined_call_operand.vmem [shape: f32[1,128], index: 3, kind: input, shape index: {}]   ;;  %s790_s4 = inlined_call_operand.hbm [shape: f32[32,128], index: 4, kind: output, shape index: {}]  }
   0x1   :  { %10 = vsyncpa [#allocation6], 0 }
   0x2   :  { %11 = vsyncpa [#allocation4], 0  ;;  %s664_s15 = smov [#allocation2]  }
   0x3   :  { %s17_s16 = sshll.u32 %s664_s15, 4  ;;  %s18_s16 = int_to_ptr.vmem [resolvable:$true] %s17_s16 }
   0x4   :  { %s606_s17 = scalar_lea.vmem %s18_s16, 512  ;;  %p611_p1 = scmp.lt.s32.totalorder %s18_s16, %s18_s16 }
   0x5   :  { %p607_p0 = scmp.ne.s32.totalorder %s18_s16, %s606_s17  ;;  %p612_p2 = scmp.lt.s32.totalorder %s606_s17, %s606_s17 }
   0x7   :  { %p613_p3 = por %p612_p2, %p611_p1 }
   0x9   :  { %p614_p4 = pnand %p613_p3, %p607_p0 }
   0xb   :  { %617 = shalt.err (!%p614_p4)
}
   0xc   :  { %s665_s18 = smov 128   ;;  %s666_s19 = smov 8  }
   0xd   :  { %23 = dma.hbm_to_vmem [thread:$0]  %s786_s0, 512, %s18_s16, [#allocation3], %s665_s18, %s665_s18, %s666_s19  }
   0xe   :  { %s667_s22 = smov [#allocation5]  }
   0xf   :  { %s29_s23 = sshll.u32 %s667_s22, 4  ;;  %s30_s23 = int_to_ptr.vmem [resolvable:$true] %s29_s23 }
  0x10   :  { %s626_s24 = scalar_lea.vmem %s30_s23, 1024  ;;  %p631_p6 = scmp.lt.s32.totalorder %s30_s23, %s30_s23 }
  0x11   :  { %p627_p5 = scmp.ne.s32.totalorder %s30_s23, %s626_s24  ;;  %p632_p7 = scmp.lt.s32.totalorder %s626_s24, %s626_s24 }
  0x13   :  { %p633_p8 = por %p632_p7, %p631_p6 }
  0x15   :  { %p634_p9 = pnand %p633_p8, %p627_p5 }
  0x17   :  { %637 = shalt.err (!%p634_p9)
}
  0x18   :  { %s668_s25 = smov 64   ;;  %s669_s26 = smov 4  }
  0x19   :  { %35 = dma.hbm_to_vmem [thread:$0]  %s787_s1, 1024, %s30_s23, [#allocation6], %s668_s25, %s668_s25, %s669_s26  }
  0x1a   :  { %658 = dma.done.wait [#allocation3], 512  }
  0x1b   :  { %659 = vsyncadd [#allocation3], 4294966784 }
  0x1c   :  { %660 = dma.done.wait [#allocation6], 1024  }
  0x1d   :  { %661 = vsyncadd [#allocation6], 4294966272  ;;  %v518_v0 = vld [vmem:[#allocation5 + $0x38] sm:$0xff]   ;;  %v519_v1 = vld [vmem:[#allocation5 + $0x30] sm:$0xff]  }
  0x1e   :  { %490 = vmatprep.subr.bf16.mxu0 %v518_v0  ;;  %v520_v2 = vld [vmem:[#allocation5 + $0x28] sm:$0xff]   ;;  %v521_v3 = vld [vmem:[#allocation5 + $0x20] sm:$0xff]   ;;  %v49_v6 = vld [vmem:[#allocation2 + $0x10] sm:$0xff] }
  0x1f   :  { %491 = vmatpush3.bf16.msra.mxu0 %v518_v0  ;;  %v47_v4 = vld [vmem:[#allocation2] sm:$0xff]  ;;  %v48_v5 = vld [vmem:[#allocation2 + $0x8] sm:$0xff]  ;;  %v71_v8 = vmul.f32 %v49_v6, %v49_v6  ;;  %v50_v10 = vld [vmem:[#allocation2 + $0x18] sm:$0xff] }
  0x20   :  { %492 = vmatprep.subr.bf16.mxu0 %v519_v1  ;;  %v81_v7 = vpack.c.bf16 %v48_v5, %v47_v4  ;;  %v69_v9 = vmul.f32 %v47_v4, %v47_v4  ;;  %v522_v11 = vld [vmem:[#allocation5 + $0x18] sm:$0xff]   ;;  %v72_v12 = vmul.f32 %v50_v10, %v50_v10  ;;  %v70_v13 = vmul.f32 %v48_v5, %v48_v5  ;;  %v523_v14 = vld [vmem:[#allocation5 + $0x10] sm:$0xff]   ;;  %v524_v15 = vld [vmem:[#allocation5 + $0x8] sm:$0xff]  }
  0x21   :  { %77 = vadd.xlane.f32.xlu1 %v71_v8  ;;  %v525_v16 = vld [vmem:[#allocation5] sm:$0xff]   ;;  %v82_v17 = vpack.c.bf16 %v50_v10, %v49_v6 }
  0x22   :  { %506 = vmatprep.mubr.bf16.mxu0 %v81_v7  ;;  %73 = vadd.xlane.f32.xlu0 %v69_v9  ;;  %v478_v32 = vld [vmem:[%s789_s3] ss:$0 sm:$0xff] }
  0x23   :  { %493 = vmatpush3.bf16.msra.mxu0 %v519_v1 }
  0x24   :  { %494 = vmatprep.subr.bf16.mxu0 %v520_v2 }
  0x25   :  { %79 = vadd.xlane.f32.xlu1 %v72_v12 }
  0x26   :  { %75 = vadd.xlane.f32.xlu0 %v70_v13 }
  0x27   :  { %495 = vmatpush3.bf16.msra.mxu0 %v520_v2 }
  0x28   :  { %496 = vmatprep.subr.bf16.mxu0 %v521_v3 }
  0x2b   :  { %497 = vmatpush3.bf16.msra.mxu0 %v521_v3 }
  0x2c   :  { %498 = vmatprep.subr.bf16.mxu0 %v522_v11 }
  0x2f   :  { %499 = vmatpush3.bf16.msra.mxu0 %v522_v11 }
  0x30   :  { %500 = vmatprep.subr.bf16.mxu0 %v523_v14 }
  0x33   :  { %501 = vmatpush3.bf16.msra.mxu0 %v523_v14 }
  0x34   :  { %502 = vmatprep.subr.bf16.mxu0 %v524_v15 }
  0x37   :  { %503 = vmatpush3.bf16.msra.mxu0 %v524_v15 }
  0x38   :  { %504 = vmatprep.subr.bf16.mxu0 %v525_v16 }
  0x3b   :  { %505 = vmatpush3.bf16.msra.mxu0 %v525_v16 }
  0x3e   :  { %507 = vmatmul.mubr.bf16.vlgmr.msra.gmra.mxu0 %v82_v17 }
  0xaa   :  { %v78_v18 = vpop.xlane.xlu1 %77 }
  0xab   :  { %v74_v19 = vpop.xlane.xlu0 %73  ;;  %v182_v20 = vsub.f32 1.0, %v78_v18  ;;  %v198_v30 = vadd.f32 1.0, %v78_v18 }
  0xac   :  { %v180_v22 = vsub.f32 1.0, %v74_v19  ;;  %v196_v31 = vadd.f32 1.0, %v74_v19 }
  0xad   :  { %v186_v23 = vmax.f32 %v182_v20, 1e-15  ;;  %v208_v34 = vmul.f32 %v478_v32, %v198_v30 }
  0xae   :  { %v80_v21 = vpop.xlane.xlu1 %79  ;;  %v184_v26 = vmax.f32 %v180_v22, 1e-15  ;;  %v206_v38 = vmul.f32 %v478_v32, %v196_v31 }
  0xaf   :  { %v183_v24 = vsub.f32 1.0, %v80_v21  ;;  %v76_v25 = vpop.xlane.xlu0 %75  ;;  %526 = vrcp.f32 %v186_v23  ;;  %v199_v33 = vadd.f32 1.0, %v80_v21 }
  0xb0   :  { %v181_v27 = vsub.f32 1.0, %v76_v25  ;;  %528 = vrcp.f32 %v184_v26  ;;  %v197_v40 = vadd.f32 1.0, %v76_v25 }
  0xb1   :  { %v187_v28 = vmax.f32 %v183_v24, 1e-15  ;;  %v209_v44 = vmul.f32 %v478_v32, %v199_v33 }
  0xb2   :  { %v185_v29 = vmax.f32 %v181_v27, 1e-15  ;;  %v207_v51 = vmul.f32 %v478_v32, %v197_v40 }
  0xb3   :  { %530 = vrcp.f32 %v187_v28  ;;  %v479_v28 = vld [vmem:[%s788_s2] ss:$0 sm:$0xff]  ;;  %s671_s2 = smov [#allocation7]  }
  0xb4   :  { %532 = vrcp.f32 %v185_v29  ;;  %s457_s30 = sshll.u32 %s671_s2, 4  ;;  %s458_s30 = int_to_ptr.vmem [resolvable:$true] %s457_s30 }
  0xb5   :  { %s638_s5 = scalar_lea.vmem %s458_s30, 512  ;;  %p643_p11 = scmp.lt.s32.totalorder %s458_s30, %s458_s30 }
  0xb6   :  { %p639_p10 = scmp.ne.s32.totalorder %s458_s30, %s638_s5  ;;  %p644_p12 = scmp.lt.s32.totalorder %s638_s5, %s638_s5 }
  0xb8   :  { %p645_p13 = por %p644_p12, %p643_p11 }
  0xba   :  { %p646_p0 = pnand %p645_p13, %p639_p10 }
  0xbc   :  { %v527_v35 = vpop.eup %526 }
  0xbd   :  { %v529_v39 = vpop.eup %528 }
  0xc0   :  { %v531_v45 = vpop.eup %530 }
  0xc1   :  { %v533_v52 = vpop.eup %532 }
  0xfe   :  { %v508_v36 = vpop.f32.mrf.mxu0 }
  0xff   :  { %v212_v37 = vsub.f32 %v508_v36, %v208_v34 }
 0x100   :  { %v165_v41 = vpop.f32.mrf.mxu0 }
 0x101   :  { %v709_v42 = vmul.f32 %v527_v35, %v212_v37  ;;  %v210_v43 = vsub.f32 %v165_v41, %v206_v38 }
 0x102   :  { %v509_v46 = vpop.f32.mrf.mxu0 }
 0x103   :  { %v220_v47 = vand.u32 2147483647, %v709_v42  ;;  %v712_v48 = vmul.f32 %v529_v39, %v210_v43  ;;  %v213_v49 = vsub.f32 %v509_v46, %v209_v44  ;;  %vm290_vm9 = vcmp.lt.f32.partialorder %v709_v42, 0.0 }
 0x104   :  { %v168_v50 = vpop.f32.mrf.mxu0 }
 0x105   :  { %v224_v53 = vmul.f32 %v220_v47, %v220_v47  ;;  %v218_v54 = vand.u32 2147483647, %v712_v48  ;;  %v715_v55 = vmul.f32 %v531_v45, %v213_v49  ;;  %v211_v56 = vsub.f32 %v168_v50, %v207_v51 }
 0x106   :  { %vm288_vm8 = vcmp.lt.f32.partialorder %v712_v48, 0.0 }
 0x107   :  { %v228_v57 = vadd.f32 1.0, %v224_v53  ;;  %v222_v58 = vmul.f32 %v218_v54, %v218_v54  ;;  %v221_v59 = vand.u32 2147483647, %v715_v55  ;;  %v718_v60 = vmul.f32 %v533_v52, %v211_v56 }
 0x108   :  { %vm291_vm11 = vcmp.lt.f32.partialorder %v715_v55, 0.0 }
 0x109   :  { %534 = vrsqrt.f32 %v228_v57  ;;  %v226_v61 = vadd.f32 1.0, %v222_v58  ;;  %v225_v62 = vmul.f32 %v221_v59, %v221_v59  ;;  %v219_v63 = vand.u32 2147483647, %v718_v60 }
 0x10a   :  { %vm246_vm0 = vcmp.eq.f32.partialorder %v228_v57, inf  ;;  %v249_v5 = vand.u32 2147483648, %v228_v57  ;;  %vm248_vm1 = vcmp.eq.f32.partialorder %v228_v57, 0.0  ;;  %vm289_vm10 = vcmp.lt.f32.partialorder %v718_v60, 0.0 }
 0x10b   :  { %536 = vrsqrt.f32 %v226_v61  ;;  %v229_v0 = vadd.f32 1.0, %v225_v62  ;;  %v223_v1 = vmul.f32 %v219_v63, %v219_v63  ;;  %vm232_vm2 = vcmp.eq.f32.partialorder %v226_v61, inf }
 0x10c   :  { %v235_v11 = vand.u32 2147483648, %v226_v61  ;;  %vm234_vm3 = vcmp.eq.f32.partialorder %v226_v61, 0.0 }
 0x10d   :  { %538 = vrsqrt.f32 %v229_v0  ;;  %v227_v2 = vadd.f32 1.0, %v223_v1  ;;  %vm253_vm4 = vcmp.eq.f32.partialorder %v229_v0, inf  ;;  %v256_v17 = vand.u32 2147483648, %v229_v0 }
 0x10e   :  { %vm255_vm5 = vcmp.eq.f32.partialorder %v229_v0, 0.0 }
 0x10f   :  { %540 = vrsqrt.f32 %v227_v2  ;;  %vm239_vm6 = vcmp.eq.f32.partialorder %v227_v2, inf  ;;  %v242_v23 = vand.u32 2147483648, %v227_v2  ;;  %vm241_vm7 = vcmp.eq.f32.partialorder %v227_v2, 0.0 }
 0x116   :  { %v535_v3 = vpop.eup %534 }
 0x117   :  { %v245_v4 = vmul.f32 %v535_v3, %v228_v57 }
 0x118   :  { %v537_v6 = vpop.eup %536 }
 0x119   :  { %v247_v7 = vsel %vm246_vm0, %v228_v57, %v245_v4  ;;  %v231_v9 = vmul.f32 %v537_v6, %v226_v61  ;;  %v670_v57 = vmov 1.0  }
 0x11a   :  { %v250_v8 = vsel %vm248_vm1, %v249_v5, %v247_v7  ;;  %v539_v12 = vpop.eup %538  ;;  %v292_v58 = vsel %vm288_vm8, -1.0, %v670_v57 }
 0x11b   :  { %v260_v10 = vadd.f32 %v250_v8, %v220_v47  ;;  %v233_v13 = vsel %vm232_vm2, %v226_v61, %v231_v9  ;;  %v252_v15 = vmul.f32 %v539_v12, %v229_v0  ;;  %v293_v9 = vsel %vm289_vm10, -1.0, %v670_v57 }
 0x11c   :  { %v236_v14 = vsel %vm234_vm3, %v235_v11, %v233_v13  ;;  %v541_v18 = vpop.eup %540  ;;  %v295_v13 = vsel %vm291_vm11, -1.0, %v670_v57  ;;  %v297_v60 = vmul.f32 0.5, %v293_v9 }
 0x11d   :  { %542 = vlog2.f32 %v260_v10  ;;  %v258_v16 = vadd.f32 %v236_v14, %v218_v54  ;;  %v254_v19 = vsel %vm253_vm4, %v229_v0, %v252_v15  ;;  %v238_v21 = vmul.f32 %v541_v18, %v227_v2 }
 0x11e   :  { %v257_v20 = vsel %vm255_vm5, %v256_v17, %v254_v19  ;;  %v299_v17 = vmul.f32 0.5, %v295_v13 }
 0x11f   :  { %544 = vlog2.f32 %v258_v16  ;;  %v261_v22 = vadd.f32 %v257_v20, %v221_v59  ;;  %v240_v24 = vsel %vm239_vm6, %v227_v2, %v238_v21  ;;  %v296_v2 = vmul.f32 0.5, %v292_v58 }
 0x120   :  { %v243_v25 = vsel %vm241_vm7, %v242_v23, %v240_v24 }
 0x121   :  { %546 = vlog2.f32 %v261_v22  ;;  %v259_v26 = vadd.f32 %v243_v25, %v219_v63  ;;  %v294_v63 = vsel %vm290_vm9, -1.0, %v670_v57 }
 0x122   :  { %v298_v6 = vmul.f32 0.5, %v294_v63 }
 0x123   :  { %548 = vlog2.f32 %v259_v26 }
 0x12a   :  { %v543_v27 = vpop.eup %542 }
 0x12b   :  { %v267_v29 = vmul.f32 0.6931472, %v543_v27 }
 0x12c   :  { %v545_v30 = vpop.eup %544 }
 0x12d   :  { %v278_v31 = vmul.f32 %v479_v28, %v267_v29  ;;  %v263_v32 = vmul.f32 0.6931472, %v545_v30 }
 0x12e   :  { %v547_v34 = vpop.eup %546 }
 0x12f   :  { %v284_v33 = vmul.f32 1.442695, %v278_v31  ;;  %v276_v35 = vmul.f32 %v479_v28, %v263_v32  ;;  %v269_v36 = vmul.f32 0.6931472, %v547_v34 }
 0x130   :  { %v549_v38 = vpop.eup %548 }
 0x131   :  { %550 = vpow2.f32 %v284_v33  ;;  %v280_v37 = vmul.f32 1.442695, %v276_v35  ;;  %v279_v39 = vmul.f32 %v479_v28, %v269_v36  ;;  %v265_v40 = vmul.f32 0.6931472, %v549_v38 }
 0x133   :  { %552 = vpow2.f32 %v280_v37  ;;  %v286_v41 = vmul.f32 1.442695, %v279_v39  ;;  %v277_v43 = vmul.f32 %v479_v28, %v265_v40 }
 0x135   :  { %554 = vpow2.f32 %v286_v41  ;;  %v282_v44 = vmul.f32 1.442695, %v277_v43 }
 0x137   :  { %556 = vpow2.f32 %v282_v44 }
 0x13e   :  { %v551_v45 = vpop.eup %550 }
 0x13f   :  { %558 = vrcp.f32 %v551_v45 }
 0x140   :  { %v553_v46 = vpop.eup %552 }
 0x141   :  { %560 = vrcp.f32 %v553_v46 }
 0x142   :  { %v555_v47 = vpop.eup %554 }
 0x143   :  { %562 = vrcp.f32 %v555_v47 }
 0x144   :  { %v557_v49 = vpop.eup %556 }
 0x145   :  { %564 = vrcp.f32 %v557_v49 }
 0x14c   :  { %v559_v50 = vpop.eup %558 }
 0x14d   :  { %v306_v51 = vmul.f32 %v559_v50, %v551_v45 }
 0x14e   :  { %v561_v52 = vpop.eup %560 }
 0x14f   :  { %v310_v53 = vsub.f32 2.0, %v306_v51  ;;  %v304_v54 = vmul.f32 %v561_v52, %v553_v46 }
 0x150   :  { %v563_v56 = vpop.eup %562 }
 0x151   :  { %v308_v59 = vsub.f32 2.0, %v304_v54  ;;  %v314_v61 = vmul.f32 %v559_v50, %v310_v53  ;;  %v307_v62 = vmul.f32 %v563_v56, %v555_v47 }
 0x152   :  { %v565_v1 = vpop.eup %564 }
 0x153   :  { %v312_v0 = vmul.f32 %v561_v52, %v308_v59  ;;  %v311_v3 = vsub.f32 2.0, %v307_v62  ;;  %v318_v5 = vsub.f32 %v551_v45, %v314_v61  ;;  %v305_v48 = vmul.f32 %v565_v1, %v557_v49 }
 0x155   :  { %v316_v4 = vsub.f32 %v553_v46, %v312_v0  ;;  %v309_v7 = vsub.f32 2.0, %v305_v48  ;;  %v315_v8 = vmul.f32 %v563_v56, %v311_v3  ;;  %v732_v11 = vmul.f32 %v318_v5, %v298_v6 }
 0x157   :  { %v728_v42 = vmul.f32 %v316_v4, %v296_v2  ;;  %v313_v12 = vmul.f32 %v565_v1, %v309_v7  ;;  %v319_v15 = vsub.f32 %v555_v47, %v315_v8  ;;  %v326_v16 = vmul.f32 %v732_v11, %v732_v11 }
 0x159   :  { %v324_v10 = vmul.f32 %v728_v42, %v728_v42  ;;  %v317_v14 = vsub.f32 %v557_v49, %v313_v12  ;;  %v740_v19 = vmul.f32 %v319_v15, %v299_v17 }
 0x15b   :  { %328 = vadd.xlane.f32.xlu0 %v324_v10  ;;  %v736_v55 = vmul.f32 %v317_v14, %v297_v60  ;;  %v327_v20 = vmul.f32 %v740_v19, %v740_v19 }
 0x15d   :  { %v325_v18 = vmul.f32 %v736_v55, %v736_v55 }
 0x15f   :  { %332 = vadd.xlane.f32.xlu0 %v326_v16  ;;  %330 = vadd.xlane.f32.xlu1 %v325_v18 }
 0x163   :  { %334 = vadd.xlane.f32.xlu1 %v327_v20 }
 0x1e4   :  { %v329_v21 = vpop.xlane.xlu0 %328 }
 0x1e5   :  { %v336_v22 = vadd.f32 1.0, %v329_v21  ;;  %v744_v29 = vmax.f32 %v329_v21, 1e-30 }
 0x1e7   :  { %566 = vrsqrt.f32 %v336_v22  ;;  %vm342_vm12 = vcmp.eq.f32.partialorder %v336_v22, inf  ;;  %v345_v32 = vand.u32 2147483648, %v336_v22  ;;  %vm344_vm13 = vcmp.eq.f32.partialorder %v336_v22, 0.0 }
 0x1e8   :  { %v333_v23 = vpop.xlane.xlu0 %332  ;;  %v331_v25 = vpop.xlane.xlu1 %330  ;;  %vm394_vm4 = vcmp.eq.f32.partialorder %v744_v29, inf  ;;  %v397_v6 = vand.u32 2147483648, %v744_v29  ;;  %vm396_vm5 = vcmp.eq.f32.partialorder %v744_v29, 0.0 }
 0x1e9   :  { %v338_v24 = vadd.f32 1.0, %v333_v23  ;;  %v337_v26 = vadd.f32 1.0, %v331_v25  ;;  %v746_v33 = vmax.f32 %v333_v23, 1e-30  ;;  %v749_v36 = vmax.f32 %v331_v25, 1e-30 }
 0x1eb   :  { %568 = vrsqrt.f32 %v338_v24  ;;  %vm356_vm14 = vcmp.eq.f32.partialorder %v338_v24, inf  ;;  %vm358_vm15 = vcmp.eq.f32.partialorder %v338_v24, 0.0  ;;  %v359_v41 = vand.u32 2147483648, %v338_v24 }
 0x1ec   :  { %570 = vrsqrt.f32 %v337_v26  ;;  %v335_v27 = vpop.xlane.xlu1 %334  ;;  %vm349_vm0 = vcmp.eq.f32.partialorder %v337_v26, inf  ;;  %v352_v45 = vand.u32 2147483648, %v337_v26  ;;  %vm351_vm1 = vcmp.eq.f32.partialorder %v337_v26, 0.0 }
 0x1ed   :  { %v339_v28 = vadd.f32 1.0, %v335_v27  ;;  %v753_v46 = vmax.f32 %v335_v27, 1e-30  ;;  %vm401_vm6 = vcmp.eq.f32.partialorder %v749_v36, inf  ;;  %vm408_vm7 = vcmp.eq.f32.partialorder %v746_v33, inf }
 0x1ee   :  { %vm410_vm8 = vcmp.eq.f32.partialorder %v746_v33, 0.0  ;;  %v411_v17 = vand.u32 2147483648, %v746_v33  ;;  %vm403_vm9 = vcmp.eq.f32.partialorder %v749_v36, 0.0 }
 0x1ef   :  { %572 = vrsqrt.f32 %v339_v28  ;;  %vm363_vm2 = vcmp.eq.f32.partialorder %v339_v28, inf  ;;  %v366_v56 = vand.u32 2147483648, %v339_v28  ;;  %vm365_vm3 = vcmp.eq.f32.partialorder %v339_v28, 0.0 }
 0x1f0   :  { %574 = vrsqrt.f32 %v744_v29  ;;  %vm415_vm10 = vcmp.eq.f32.partialorder %v753_v46, inf  ;;  %vm417_vm11 = vcmp.eq.f32.partialorder %v753_v46, 0.0 }
 0x1f1   :  { %576 = vrsqrt.f32 %v746_v33 }
 0x1f4   :  { %v567_v30 = vpop.eup %566 }
 0x1f5   :  { %v341_v31 = vmul.f32 %v567_v30, %v336_v22 }
 0x1f7   :  { %v343_v34 = vsel %vm342_vm12, %v336_v22, %v341_v31 }
 0x1f8   :  { %v569_v35 = vpop.eup %568  ;;  %v346_v37 = vsel %vm344_vm13, %v345_v32, %v343_v34 }
 0x1f9   :  { %v355_v38 = vmul.f32 %v569_v35, %v338_v24  ;;  %v368_v39 = vadd.f32 1.0, %v346_v37  ;;  %v571_v40 = vpop.eup %570 }
 0x1fa   :  { %v348_v43 = vmul.f32 %v571_v40, %v337_v26 }
 0x1fb   :  { %v357_v44 = vsel %vm356_vm14, %v338_v24, %v355_v38  ;;  %578 = vrcp.f32 %v368_v39  ;;  %v404_v24 = vand.u32 2147483648, %v749_v36 }
 0x1fc   :  { %580 = vrsqrt.f32 %v749_v36  ;;  %v360_v47 = vsel %vm358_vm15, %v359_v41, %v357_v44  ;;  %v350_v49 = vsel %vm349_vm0, %v337_v26, %v348_v43  ;;  %v573_v51 = vpop.eup %572 }
 0x1fd   :  { %v370_v50 = vadd.f32 1.0, %v360_v47  ;;  %v353_v52 = vsel %vm351_vm1, %v352_v45, %v350_v49  ;;  %v362_v53 = vmul.f32 %v573_v51, %v339_v28  ;;  %v575_v61 = vpop.eup %574 }
 0x1fe   :  { %v369_v54 = vadd.f32 1.0, %v353_v52  ;;  %v577_v62 = vpop.eup %576  ;;  %v393_v63 = vmul.f32 %v575_v61, %v744_v29 }
 0x1ff   :  { %582 = vrcp.f32 %v370_v50  ;;  %v364_v57 = vsel %vm363_vm2, %v339_v28, %v362_v53  ;;  %v407_v3 = vmul.f32 %v577_v62, %v746_v33 }
 0x200   :  { %584 = vrsqrt.f32 %v753_v46  ;;  %v367_v58 = vsel %vm365_vm3, %v366_v56, %v364_v57  ;;  %v395_v5 = vsel %vm394_vm4, %v744_v29, %v393_v63 }
 0x201   :  { %586 = vrcp.f32 %v369_v54  ;;  %v371_v59 = vadd.f32 1.0, %v367_v58  ;;  %v398_v13 = vsel %vm396_vm5, %v397_v6, %v395_v5  ;;  %v409_v60 = vsel %vm408_vm7, %v746_v33, %v407_v3 }
 0x202   :  { %v412_v25 = vsel %vm410_vm8, %v411_v17, %v409_v60  ;;  %v418_v33 = vand.u32 2147483648, %v753_v46 }
 0x203   :  { %588 = vrcp.f32 %v371_v59 }
 0x208   :  { %v579_v0 = vpop.eup %578 }
 0x209   :  { %v581_v1 = vpop.eup %580  ;;  %v376_v2 = vmul.f32 %v579_v0, %v368_v39 }
 0x20a   :  { %v400_v7 = vmul.f32 %v581_v1, %v749_v36 }
 0x20b   :  { %v380_v4 = vsub.f32 2.0, %v376_v2 }
 0x20c   :  { %v583_v48 = vpop.eup %582  ;;  %v402_v18 = vsel %vm401_vm6, %v749_v36, %v400_v7 }
 0x20d   :  { %v585_v8 = vpop.eup %584  ;;  %v378_v9 = vmul.f32 %v583_v48, %v370_v50  ;;  %v384_v10 = vmul.f32 %v579_v0, %v380_v4  ;;  %v405_v29 = vsel %vm403_vm9, %v404_v24, %v402_v18 }
 0x20e   :  { %v587_v12 = vpop.eup %586  ;;  %v414_v20 = vmul.f32 %v585_v8, %v753_v46 }
 0x20f   :  { %v377_v14 = vmul.f32 %v587_v12, %v369_v54  ;;  %v382_v15 = vsub.f32 2.0, %v378_v9  ;;  %v420_v16 = vmul.f32 %v398_v13, %v384_v10 }
 0x210   :  { %v589_v23 = vpop.eup %588  ;;  %v416_v30 = vsel %vm415_vm10, %v753_v46, %v414_v20 }
 0x211   :  { %v381_v21 = vsub.f32 2.0, %v377_v14  ;;  %v386_v22 = vmul.f32 %v583_v48, %v382_v15  ;;  %590 = vrcp.f32 %v420_v16  ;;  %v379_v26 = vmul.f32 %v589_v23, %v371_v59 }
 0x212   :  { %v419_v35 = vsel %vm417_vm11, %v418_v33, %v416_v30  ;;  %vm424_vm12 = vcmp.gt.f32.partialorder %v420_v16, 0.996 }
 0x213   :  { %v385_v27 = vmul.f32 %v587_v12, %v381_v21  ;;  %v422_v28 = vmul.f32 %v412_v25, %v386_v22  ;;  %v383_v31 = vsub.f32 2.0, %v379_v26 }
 0x215   :  { %v421_v32 = vmul.f32 %v405_v29, %v385_v27  ;;  %592 = vrcp.f32 %v422_v28  ;;  %v387_v34 = vmul.f32 %v589_v23, %v383_v31  ;;  %vm426_vm13 = vcmp.gt.f32.partialorder %v422_v28, 0.996 }
 0x217   :  { %594 = vrcp.f32 %v421_v32  ;;  %v423_v37 = vmul.f32 %v419_v35, %v387_v34  ;;  %vm425_vm14 = vcmp.gt.f32.partialorder %v421_v32, 0.996 }
 0x219   :  { %596 = vrcp.f32 %v423_v37  ;;  %vm427_vm15 = vcmp.gt.f32.partialorder %v423_v37, 0.996 }
 0x21e   :  { %v591_v38 = vpop.eup %590 }
 0x21f   :  { %v432_v36 = vmul.f32 0.996, %v591_v38 }
 0x221   :  { %v436_v39 = vsel %vm424_vm12, %v432_v36, 1.0 }
 0x222   :  { %v593_v40 = vpop.eup %592  ;;  %v440_v41 = vmul.f32 %v436_v39, %v384_v10 }
 0x223   :  { %v434_v43 = vmul.f32 0.996, %v593_v40 }
 0x224   :  { %v595_v44 = vpop.eup %594  ;;  %v444_v45 = vmul.f32 %v440_v41, %v728_v42 }
 0x225   :  { %v433_v47 = vmul.f32 0.996, %v595_v44  ;;  %v438_v49 = vsel %vm426_vm13, %v434_v43, 1.0 }
 0x226   :  { %v442_v46 = vmul.f32 %v438_v49, %v386_v22  ;;  %448 = vst [vmem:[#allocation7] sm:$0xff] %v444_v45  ;;  %v597_v51 = vpop.eup %596 }
 0x227   :  { %v437_v50 = vsel %vm425_vm14, %v433_v47, 1.0  ;;  %v435_v54 = vmul.f32 0.996, %v597_v51 }
 0x228   :  { %v441_v52 = vmul.f32 %v437_v50, %v385_v27  ;;  %v446_v53 = vmul.f32 %v442_v46, %v732_v11 }
 0x229   :  { %v439_v57 = vsel %vm427_vm15, %v435_v54, 1.0 }
 0x22a   :  { %v445_v56 = vmul.f32 %v441_v52, %v736_v55  ;;  %450 = vst [vmem:[#allocation7 + $0x10] sm:$0xff] %v446_v53  ;;  %v443_v58 = vmul.f32 %v439_v57, %v387_v34 }
 0x22c   :  { %449 = vst [vmem:[#allocation7 + $0x8] sm:$0xff] %v445_v56  ;;  %v447_v42 = vmul.f32 %v443_v58, %v740_v19 }
 0x22e   :  { %451 = vst [vmem:[#allocation7 + $0x18] sm:$0xff] %v447_v42 }
 0x22f   :  { %649 = shalt.err (!%p646_p0)
}
 0x230   :  { %463 = dma.vmem_to_hbm [thread:$0]  %s458_s30, 512, %s790_s4, [#allocation4], %s665_s18, %s665_s18, %s666_s19  }
 0x231   :  { %662 = dma.done.wait [#allocation4], 512  }
 0x232   :  { %663 = vsyncadd [#allocation4], 4294966784 }
 0x233   :  { %467 = vsyncpa [#allocation3], 1 }
 0x234   :  { %468 = vsyncpa [#allocation6], 1 }
 0x235   :  { %469 = vsyncpa [#allocation4], 1 }

</bundles_post_ra>
